<compile_context>
chip_gen: v7x
topology: tpu7x:2x2x1
jax: 0.10.0
libtpu: 0.0.40
codegen_flags: <defaults>
</compile_context>

<pallas_src>
import math

import jax
import jax.numpy as jnp
import numpy as np
from jax.experimental import pallas as pl
from jax.experimental.pallas import tpu as pltpu


# ----------------------------- Pallas kernel -------------------------------


def sinc_conv_gemm_kernel(x_ref, m_ref, o_ref):
    # x_ref: (bt, K)      -- bt batch rows of one electrode, one time chunk (+ halo)
    # m_ref: (K, F*C)     -- block-Toeplitz filter matrix of this electrode
    # o_ref: (bt, F*C)    -- F filters x C output samples, lane-dense
    o_ref[...] = jnp.dot(
        x_ref[...], m_ref[...], preferred_element_type=jnp.float32
    ).astype(o_ref.dtype)


# ------------------------------- wrapper ------------------------------------


def build_toeplitz_bank(filters_efl, C):
    """(E, F, L) filter bank -> (E, K, F*C) block-Toeplitz matrices, K = C + L - 1.

    M[e, c + l, f*C + c] = filters[e, f, l]  so that  (x_window @ M[e])[f*C + c]
    = sum_l x_window[c + l] * filters[e, f, l]  (valid cross-correlation).
    """
    E, F, L = filters_efl.shape
    K = C + L - 1
    k = jnp.arange(K)[:, None]          # (K, 1)
    c = jnp.arange(C)[None, :]          # (1, C)
    l = k - c                           # (K, C)
    valid = (l >= 0) & (l < L)
    l_safe = jnp.clip(l, 0, L - 1)
    taps = filters_efl[:, :, l_safe]                       # (E, F, K, C)
    taps = jnp.where(valid[None, None, :, :], taps, 0.0)   # zero outside the band
    M = jnp.transpose(taps, (0, 2, 1, 3)).reshape(E, K, F * C)
    return M


def chspec_sinc_conv_pallas(x, filters_efl, *, row_tile=256, chunk=None):
    """x: (B, E, T) f32, filters_efl: (E, F, L) f32 -> (B, E*F, T - L + 1)."""
    B, E, T = x.shape
    E2, Fn, L = filters_efl.shape
    assert E2 == E
    T_out = T - L + 1

    # --- time chunking: K = C + L - 1 is the GEMM contraction width -------------
    if chunk is None:
        # single chunk for short signals; otherwise K = 256 (native MXU contraction
        # width on v6e/v7x; still fine on v5e's 128-wide MXU, just two passes).
        chunk = T_out if (T_out + L - 1) <= 512 else (256 - (L - 1))
    C = min(chunk, T_out)
    J = -(-T_out // C)                      # number of time chunks
    K = C + L - 1
    T_in_needed = (J - 1) * C + K

    # --- batch tiling (rows per grid step) --------------------------------------
    bt = min(row_tile, B)
    if B > bt:                              # tiled case: sublane-aligned tile
        bt = max(8, (bt // 8) * 8)
    B_pad = -(-B // bt) * bt

    # layout (E, B, T): rows grouped per electrode so every grid step uses exactly
    # one electrode's Toeplitz block.
    x_ebt = jnp.transpose(x, (1, 0, 2))
    x_ebt = jnp.pad(x_ebt, ((0, 0), (0, B_pad - B), (0, T_in_needed - T)))
    # Materialize overlapping (halo = L-1) time chunks: (E, J, B_pad, K).
    gather_idx = (jnp.arange(J) * C)[:, None] + jnp.arange(K)[None, :]
    x_chunks = jnp.transpose(x_ebt[:, :, gather_idx], (0, 2, 1, 3))

    M = build_toeplitz_bank(filters_efl, C)  # (E, K, F*C)
    FC = Fn * C

    grid = (E, B_pad // bt, J)
    flops = 2 * E * J * B_pad * K * FC                     # actual MXU work
    bytes_accessed = 4 * (x_chunks.size + M.size + E * J * B_pad * FC)

    out = pl.pallas_call(
        sinc_conv_gemm_kernel,
        out_shape=jax.ShapeDtypeStruct((E, J, B_pad, FC), x.dtype),
        grid_spec=pltpu.PrefetchScalarGridSpec(
            num_scalar_prefetch=0,
            grid=grid,
            in_specs=[
                # x chunk: electrode e, time chunk j, batch tile i
                pl.BlockSpec((None, None, bt, K), lambda e, i, j: (e, j, i, 0)),
                # Toeplitz filter matrix: depends only on e -> not re-fetched while
                # the inner batch/time axes iterate.
                pl.BlockSpec((None, K, FC), lambda e, i, j: (e, 0, 0)),
            ],
            out_specs=pl.BlockSpec((None, None, bt, FC),
                                   lambda e, i, j: (e, j, i, 0)),
        ),
        compiler_params=pltpu.CompilerParams(
            dimension_semantics=("parallel", "parallel", "parallel"),
            vmem_limit_bytes=48 * 1024 * 1024,   # safe on v5e/v6e (128 MiB) and v7x (64 MiB)
        ),
        cost_estimate=pl.CostEstimate(
            flops=flops, transcendentals=0, bytes_accessed=bytes_accessed),
    )(x_chunks, M)

    # (E, J, B_pad, F*C) -> (B, E*F, T_out)  (channel order e-major, matching
    # F.conv1d(..., groups=n_elecs): out channel = e*F + f).
    out = out[:, :, :B, :].reshape(E, J, B, Fn, C)
    out = jnp.transpose(out, (2, 0, 3, 1, 4)).reshape(B, E * Fn, J * C)
    return out[:, :, :T_out]
    # Note: the module config used here has bias=None; a per-channel bias would be
    # a trivial broadcast add on the result.


# ------------------------- filter bank (JAX glue) ---------------------------


def build_sinc_filters(lows_, widths_, t_right, window, *, fs, f_min,
                       width_min, low_max):
    """Reproduces the filter construction in ChSpecSincConv.forward.

    lows_, widths_: (E*F,) normalized params -> returns (E*F, L) filters.
    """
    lows = jnp.clip(lows_, f_min / fs, low_max / fs)
    highs = lows + jnp.maximum(widths_, width_min / fs)

    def lowpass(f_norm):
        band = f_norm * fs                                    # Hz
        arg = 2.0 * math.pi * band[:, None] * t_right[None, :]
        y_right = jnp.sin(arg) / arg                          # (N, (L-1)/2)
        y_left = y_right[:, ::-1]
        ones = jnp.ones((band.shape[0], 1), dtype=y_right.dtype)
        y = jnp.concatenate([y_left, ones, y_right], axis=1)  # (N, L)
        return 2.0 * f_norm[:, None] * y

    band_fb = lowpass(highs) - lowpass(lows)
    band_fb = band_fb / jnp.max(band_fb, axis=1, keepdims=True)
    return band_fb * window[None, :]


# --------------------------------- main -------------------------------------


if __name__ == "__main__":
    # Module hyper-parameters (spacing='rand', bias=None).
    n_elecs = 4
    n_filters = 8
    filter_length = 17
    fs = 128
    f_min = 1
    width_min = 1
    nyquist_f = int((fs - 1) / 2)          # 63
    low_max = nyquist_f - width_min        # 62

    key = jax.random.PRNGKey(0)
    k_cut, k_wid, k_x = jax.random.split(key, 3)

    # Per-electrode random cutoffs / widths, mirroring __init__ ('rand' spacing):
    # lows_ and widths_ have length n_elecs * n_filters (channel-specific filters).
    cutoffs = jax.random.uniform(
        k_cut, (n_elecs, n_filters + 1), minval=float(f_min),
        maxval=float(nyquist_f + 1), dtype=jnp.float32)
    cutoffs = jnp.sort(cutoffs, axis=1)
    lows_ = (cutoffs[:, :-1] / fs).reshape(-1)                       # (E*F,)
    widths_ = jax.random.uniform(
        k_wid, (n_elecs * n_filters,), minval=1.0,
        maxval=float(nyquist_f), dtype=jnp.float32) / fs             # (E*F,)

    window = jnp.asarray(np.hamming(filter_length), dtype=jnp.float32)  # (L,)
    n_half = (filter_length - 1) // 2
    t_right = jnp.linspace(1.0, (filter_length - 1) / 2.0, n_half,
                           dtype=jnp.float32) / fs                   # ((L-1)/2,)

    # Example input: B=2, E=4 electrodes, T=256 time samples.
    B, T = 2, 256
    x = jax.random.normal(k_x, (B, n_elecs, T), dtype=jnp.float32)

    # Forward pass.
    filters = build_sinc_filters(
        lows_, widths_, t_right, window,
        fs=fs, f_min=f_min, width_min=width_min, low_max=low_max)     # (E*F, L)
    filters_efl = filters.reshape(n_elecs, n_filters, filter_length)  # (E, F, L)
    filters_efl = jax.block_until_ready(filters_efl)

    y = chspec_sinc_conv_pallas(x, filters_efl)
    y = jax.block_until_ready(y)

    # float64 numpy reference of the grouped valid cross-correlation.
    T_out = T - filter_length + 1
    xn = np.asarray(x, dtype=np.float64)                 # (B, E, T)
    wn = np.asarray(filters_efl, dtype=np.float64)       # (E, F, L)
    ref = np.zeros((B, n_elecs, n_filters, T_out), dtype=np.float64)
    for l in range(filter_length):
        ref += xn[:, :, None, l:l + T_out] * wn[None, :, :, l:l + 1]
    ref = ref.reshape(B, n_elecs * n_filters, T_out)

    assert y.shape == (B, n_elecs * n_filters, T_out), y.shape
    # Tolerance accounts for possible reduced-precision multi-pass f32 matmul on the
    # MXU (per review: MXU path => relax the 1e-5 check). Structural errors (wrong
    # electrode's filters, shifted taps, wrong Toeplitz layout) produce O(1) errors
    # and are still caught.
    np.testing.assert_allclose(np.asarray(y, dtype=np.float64), ref,
                               rtol=5e-2, atol=5e-2)

    print("KERNEL_OK")
</pallas_src>

<mosaic_0001>
module attributes {stable_mosaic.version = 11 : i64} {
  func.func @sinc_conv_gemm_kernel(%arg0: i32, %arg1: i32, %arg2: i32, %arg3: memref<1x1x2x256xf32, #tpu.memory_space<vmem>>, %arg4: memref<1x256x1920xf32, #tpu.memory_space<vmem>>, %arg5: memref<1x1x2x1920xf32, #tpu.memory_space<vmem>>) attributes {dimension_semantics = [#tpu.dimension_semantics<parallel>, #tpu.dimension_semantics<parallel>, #tpu.dimension_semantics<parallel>], iteration_bounds = array<i64: 4, 1, 1>, scalar_prefetch = 0 : i64, scratch_operands = 0 : i64, tpu.core_type = #tpu.core_type<tc>, window_params = [{transform_indices = @transform_0, window_bounds = array<i64: 1, 1, 2, 256>}, {transform_indices = @transform_1, window_bounds = array<i64: 1, 256, 1920>}, {transform_indices = @transform_2, window_bounds = array<i64: 1, 1, 2, 1920>}]} {
    %c0 = arith.constant 0 : index
    %c0_0 = arith.constant 0 : index
    %c0_1 = arith.constant 0 : index
    %c0_2 = arith.constant 0 : index
    %0 = vector.load %arg3[%c0, %c0_0, %c0_1, %c0_2] : memref<1x1x2x256xf32, #tpu.memory_space<vmem>>, vector<1x1x2x256xf32>
    %1 = vector.shape_cast %0 : vector<1x1x2x256xf32> to vector<2x256xf32>
    %c0_3 = arith.constant 0 : index
    %c0_4 = arith.constant 0 : index
    %c0_5 = arith.constant 0 : index
    %2 = vector.load %arg4[%c0_3, %c0_4, %c0_5] : memref<1x256x1920xf32, #tpu.memory_space<vmem>>, vector<1x256x1920xf32>
    %3 = vector.shape_cast %2 : vector<1x256x1920xf32> to vector<256x1920xf32>
    %cst = arith.constant dense<0.000000e+00> : vector<2x1920xf32>
    %4 = tpu.matmul %1, %3, %cst {dimension_numbers = #tpu.dot_dimension_numbers<[1], [0], [0], [1], [0, 0, 1, 1], [], []>} : vector<2x256xf32>, vector<256x1920xf32>, vector<2x1920xf32> -> vector<2x1920xf32>
    %c0_6 = arith.constant 0 : index
    %c0_7 = arith.constant 0 : index
    %c0_8 = arith.constant 0 : index
    %c0_9 = arith.constant 0 : index
    %5 = vector.load %arg5[%c0_6, %c0_7, %c0_8, %c0_9] : memref<1x1x2x1920xf32, #tpu.memory_space<vmem>>, vector<1x1x2x1920xf32>
    %6 = vector.shape_cast %5 : vector<1x1x2x1920xf32> to vector<2x1920xf32>
    %7 = vector.shape_cast %4 : vector<2x1920xf32> to vector<1x1x2x1920xf32>
    tpu.vector_store %arg5[%c0_6, %c0_7, %c0_8, %c0_9], %7 {strides = array<i32>} : memref<1x1x2x1920xf32, #tpu.memory_space<vmem>>, vector<1x1x2x1920xf32>,
    return
  }
  func.func @transform_0(%arg0: i32, %arg1: i32, %arg2: i32) -> (i32, i32, i32, i32) {
    %c0_i32 = arith.constant 0 : i32
    %c0_i32_0 = arith.constant 0 : i32
    return %arg0, %arg2, %arg1, %c0_i32 : i32, i32, i32, i32
  }
  func.func @transform_1(%arg0: i32, %arg1: i32, %arg2: i32) -> (i32, i32, i32) {
    %c0_i32 = arith.constant 0 : i32
    %c0_i32_0 = arith.constant 0 : i32
    %c0_i32_1 = arith.constant 0 : i32
    return %arg0, %c0_i32, %c0_i32_0 : i32, i32, i32
  }
  func.func @transform_2(%arg0: i32, %arg1: i32, %arg2: i32) -> (i32, i32, i32, i32) {
    %c0_i32 = arith.constant 0 : i32
    %c0_i32_0 = arith.constant 0 : i32
    return %arg0, %arg2, %arg1, %c0_i32 : i32, i32, i32, i32
  }
}

</mosaic_0001>

<bundles_post_ra>
// kernel: tpu_custom_call.1
= control target key start
LH: loop header
LB: loop body
LE: loop exit
PB: predicated region body
PF: predicated region fallthrough
CT: control target
= control target key end

     0   :  { %7 = vsyncpa [#allocation3], 0  ;;  %s3027_s0 = inlined_call_operand.hbm [shape: f32[4,1,2,256], index: 0, kind: input, shape index: {}]   ;;  %s3028_s1 = inlined_call_operand.hbm [shape: f32[4,256,1920], index: 1, kind: input, shape index: {}]   ;;  %s3029_s2 = inlined_call_operand.hbm [shape: f32[4,1,2,1920], index: 2, kind: output, shape index: {}]  }
   0x1   :  { %9 = vsyncpa [#allocation3 + $0x1], 0 }
   0x2   :  { %10 = vsyncpa [#allocation6], 0 }
   0x3   :  { %12 = vsyncpa [#allocation6 + $0x1], 0 }
   0x4   :  { %13 = vsyncpa [#allocation4], 0 }
   0x5   :  { %15 = vsyncpa [#allocation4 + $0x1], 0  ;;  %s2288_s9 = smov 0   ;;  %s2290_s10 = smov 0  }
   0x6   :  { %s2292_s11 = smov 0   ;;  %s2294_s12 = smov 0  }
   0x7   :  { %s2296_s13 = smov 0   ;;  %s2298_s14 = smov 0  }
   0x8 LB: > { %s1513_s15 = sadd.s32 4294967295, %s2265_s14   ;;  %s1514_s16 = sadd.s32 4294967294, %s2265_s14   ;;  %s2265_s14 = sphi %s2298_s14, %s21_s14   ;;  %s2261_s13 = sphi %s2296_s13, %s3047_s13   ;;  %s2257_s12 = sphi %s2294_s12, %s3046_s12   ;;  %s2253_s11 = sphi %s2292_s11, %s3045_s11   ;;  %s2249_s10 = sphi %s2290_s10, %s3044_s10   ;;  %s2245_s9 = sphi %s2288_s9, %s3043_s9  }
   0x9   : > { %s40_s17 = sadd.s32 1, %s2261_s13  ;;  %s51_s18 = sadd.s32 1, %s2253_s11 }
   0xa   : > { %p42_p0 = scmp.ge.s32.totalorder %s40_s17, 4  ;;  %p58_p1 = scmp.ne.s32.totalorder %s2253_s11, %s2249_s10 }
   0xb   : > { %p59_p2 = scmp.eq.s32.totalorder %s2265_s14, 0  ;;  %p64_p3 = scmp.ne.s32.totalorder %s2249_s10, %s2245_s9 }
   0xc   : > { %s3049_s17 = smov (%p42_p0, %s40_s17), 0  ;;  %p65_p5 = scmp.eq.s32.totalorder %s1513_s15, 0 }
   0xd   : > { %p2329_p4 = por %p59_p2, %p58_p1  ;;  %s44_s20 = ssub.s32 %s2261_s13, %s3049_s17 }
   0xe   : > { %p118_p6 = scmp.eq.s32.totalorder %s1513_s15, 3  ;;  %p49_p7 = scmp.eq.s32.totalorder %s44_s20, 0 }
   0xf   : > { %p2335_p8 = por %p65_p5, %p64_p3  ;;  %p124_p10 = scmp.eq.s32.totalorder %s1514_s16, 3 }
  0x10   : > { %p2339_p9 = por %p118_p6, %p58_p1  ;;  %p2065_p12 = scmp.lt.s32.totalorder %s2265_s14, 4 }
  0x11   : > { %s3033_s21 = scalar_select %p2335_p8, 1, 0 }
  0x12   : > { %s3034_s22 = scalar_select %p2339_p9, 1, 0 }
  0x13   : > { %s2344_s23 = scalar_select %p49_p7, %s2253_s11, %s51_s18  }
  0x14   : > { %p2346_p11 = por %p124_p10, %p64_p3  ;;  %s2352_s25 = sand.u32 1, %s2253_s11  }
  0x15   : > { %s1517_s26 = sshll.u32 %s2352_s25, 2  ;;  %s1527_s27 = sshll.u32 %s2261_s13, 6 }
  0x16   : > { %s3035_s24 = scalar_select %p2346_p11, 1, 0 }
  0x17   : > { %s2359_s30 = scalar_lea.hbm %s3027_s0, %s1527_s27  ;;  %s148_s3 = scalar_lea.vmem [#allocation2], %s1517_s26 }
  0x18   : > { %s160_s4 = sshll.u32 %s148_s3, 4  ;;  %p2365_p13 = pnand %p2065_p12, %p2329_p4  ;;  %s2361_s4 = int_to_ptr.vmem [resolvable:$true] %s160_s4 }
  0x19   : > { %s145_s6 = scalar_lea.sflag [#allocation3], %s2352_s25  ;;  %s2119_s7 = scalar_lea.hbm %s2359_s30, 64 }
  0x1a   : > { %p2120_p2 = scmp.ne.s32.totalorder %s2359_s30, %s2119_s7  ;;  %p2121_p3 = pneg %p2365_p13 }
  0x1b   : > { %s2124_s16 = scalar_lea.hbm %s3027_s0, 256  ;;  %p2125_p4 = scmp.lt.u32.totalorder %s2359_s30, %s3027_s0 }
  0x1c   : > { %p2122_p5 = pnand %p2121_p3, %p2120_p2  ;;  %p2126_p7 = scmp.lt.u32.totalorder %s2124_s16, %s2119_s7 }
  0x1d   : > { %p2128_p12 = scmp.lt.u32.totalorder %s2119_s7, %s2359_s30 }
  0x1e   : > { %p2123_p6 = pneg %p2122_p5  ;;  %p2127_p10 = por %p2126_p7, %p2125_p4 }
  0x20   : > { %p2129_p0 = por %p2128_p12, %p2127_p10 }
  0x22   : > { %p2130_p1 = pnand %p2129_p0, %p2123_p6 }
  0x24   : > { %2133 = shalt.err (!%p2130_p1)
}
  0x25   : > { %s2134_s20 = scalar_lea.vmem %s2361_s4, 64  ;;  %s2267_s26 = smov [#allocation2]  }
  0x26   : > { %p2135_p2 = scmp.ne.s32.totalorder %s2361_s4, %s2134_s20  ;;  %s2139_s27 = sshll.u32 %s2267_s26, 4  ;;  %s2140_s27 = int_to_ptr.vmem [resolvable:$false] %s2139_s27 }
  0x27   : > { %s2141_s28 = scalar_lea.vmem %s2140_s27, 128  ;;  %p2142_p9 = scmp.lt.s32.totalorder %s2361_s4, %s2140_s27 }
  0x28   : > { %p2137_p5 = pnand %p2135_p2, %p2121_p3  ;;  %p2143_p4 = scmp.lt.s32.totalorder %s2141_s28, %s2134_s20 }
  0x2a   : > { %p2138_p11 = pneg %p2137_p5  ;;  %p2144_p7 = por %p2143_p4, %p2142_p9 }
  0x2c   : > { %p2145_p10 = pnand %p2144_p7, %p2138_p11 }
  0x2e   : > { %2148 = shalt.err (!%p2145_p10)
}
  0x2f   : > { %2057 = dma.hbm_to_vmem [thread:$0]  (!%p2365_p13), %s2359_s30, 64, %s2361_s4, %s145_s6  }
  0x30   : > { %p3037_p0 = scmp.lt.s32.totalorder %s2265_s14, 5  ;;  %p3038_p1 = scmp.ge.s32.totalorder %s2265_s14, 1 }
  0x31   : > { %s2043_s3 = smul.u32 3840, %s2352_s25  ;;  %s168_s30 = scalar_lea.sflag [#allocation6], %s2352_s25 }
  0x32   : > { %p2401_p6 = pnand %p3038_p1, %p3037_p0  ;;  %s2044_s7 = smul.u32 61440, %s2261_s13 }
  0x33   : > { %s171_s18 = scalar_lea.vmem [#allocation5], %s2043_s3  ;;  %s2154_s26 = scalar_lea.hbm %s3028_s1, 245760 }
  0x34   : > { %s2410_s16 = scalar_lea.hbm %s3028_s1, %s2044_s7  ;;  %s178_s19 = sshll.u32 %s171_s18, 4  ;;  %s2412_s19 = int_to_ptr.vmem [resolvable:$true] %s178_s19 }
  0x35   : > { %s2149_s4 = scalar_lea.hbm %s2410_s16, 61440  ;;  %p2155_p2 = scmp.lt.u32.totalorder %s2410_s16, %s3028_s1 }
  0x36   : > { %p2150_p9 = scmp.ne.s32.totalorder %s2410_s16, %s2149_s4  ;;  %p2156_p5 = scmp.lt.u32.totalorder %s2154_s26, %s2149_s4 }
  0x37   : > { %p2158_p7 = scmp.lt.u32.totalorder %s2149_s4, %s2410_s16 }
  0x38   : > { %p2152_p11 = pnand %p2150_p9, %p2121_p3  ;;  %p2157_p4 = por %p2156_p5, %p2155_p2 }
  0x3a   : > { %p2153_p12 = pneg %p2152_p11  ;;  %p2159_p10 = por %p2158_p7, %p2157_p4 }
  0x3c   : > { %p2160_p0 = pnand %p2159_p10, %p2153_p12 }
  0x3e   : > { %2163 = shalt.err (!%p2160_p0)
}
  0x3f   : > { %s2164_s3 = scalar_lea.vmem %s2412_s19, 61440  ;;  %s2268_s7 = smov [#allocation5]  }
  0x40   : > { %p2165_p1 = scmp.ne.s32.totalorder %s2412_s19, %s2164_s3  ;;  %s2169_s8 = sshll.u32 %s2268_s7, 4  ;;  %s2170_s8 = int_to_ptr.vmem [resolvable:$false] %s2169_s8 }
  0x41   : > { %s2171_s15 = scalar_lea.vmem %s2170_s8, 122880  ;;  %p2172_p8 = scmp.lt.s32.totalorder %s2412_s19, %s2170_s8 }
  0x42   : > { %p2167_p9 = pnand %p2165_p1, %p2121_p3  ;;  %p2173_p2 = scmp.lt.s32.totalorder %s2171_s15, %s2164_s3 }
  0x44   : > { %p2168_p11 = pneg %p2167_p9  ;;  %p2174_p5 = por %p2173_p2, %p2172_p8 }
  0x46   : > { %p2175_p4 = pnand %p2174_p5, %p2168_p11 }
  0x48   : > { %2178 = shalt.err (!%p2175_p4)
}
  0x49   : > { %s2269_s18 = smov 1920   ;;  %s2270_s4 = smov 120  }
  0x4a   : > { %2060 = dma.hbm_to_vmem [thread:$0]  (!%p2365_p13), %s2410_s16, 61440, %s2412_s19, %s168_s30, %s2269_s18, %s2269_s18, %s2270_s4  }
  0x4b   : > { %190 = sbr.rel (%p2401_p6) target bundleno = 580 (0x244), region = 28  ;;  %s2443_s6 = sand.u32 (!%p2401_p6), 1, %s2249_s10  }
  0x4c   : > { %s1522_s20 = sshll.u32 (!%p2401_p6), %s2443_s6, 2  ;;  %s193_s26 = scalar_lea.sflag (!%p2401_p6), [#allocation3], %s2443_s6 }
  0x4d   : > { %s2447_s27 = scalar_lea.vmem (!%p2401_p6), [#allocation2], %s1522_s20  ;;  %p3040_p8 = scmp.ne.s32.totalorder (!%p2401_p6), %s3033_s21, 0 }
  0x52   : > { %2232 = dma.done.wait (%p3040_p8), %s193_s26, 64  }
  0x53   : > { %2234 = vsyncadd (%p3040_p8), %s193_s26, 4294967232  ;;  %s2045_s25 = smul.u32 3840, %s2443_s6  ;;  %s202_s5 = scalar_lea.sflag [#allocation6], %s2443_s6 }
  0x55   : > { %s2455_s29 = scalar_lea.vmem [#allocation5], %s2045_s25 }
  0x56   : > { %2236 = dma.done.wait (%p3040_p8), %s202_s5, 61440  }
  0x57   : > { %2238 = vsyncadd (%p3040_p8), %s202_s5, 4294905856  ;;  %v233_v0 = vld [vmem:[%s2455_s29 + $0x8] sm:$0xff]  ;;  %v248_v1 = vld [vmem:[%s2455_s29 + $0x80] sm:$0xff]  ;;  %s2046_s21 = smul.u32 30, %s2443_s6  ;;  %s1381_s8 = scalar_lea.sflag [#allocation4], %s2443_s6 }
  0x58   : > { %v235_v2 = vld [vmem:[%s2455_s29 + $0x18] sm:$0xff]  ;;  %v1563_v3 = vpack.c.bf16 %v248_v1, %v233_v0  ;;  %v250_v4 = vld [vmem:[%s2455_s29 + $0x90] sm:$0xff]  ;;  %v232_v5 = vld [vmem:[%s2455_s29] sm:$0xff]  ;;  %s2047_s19 = smul.u32 480, %s2257_s12  ;;  %p3041_p3 = scmp.ne.s32.totalorder %s3034_s22, 0 }
  0x59   : > { %v247_v6 = vld [vmem:[%s2455_s29 + $0x78] sm:$0xff]  ;;  %v1627_v7 = vpack.c.bf16 %v250_v4, %v235_v2  ;;  %v234_v9 = vld [vmem:[%s2455_s29 + $0x10] sm:$0xff]  ;;  %v249_v10 = vld [vmem:[%s2455_s29 + $0x88] sm:$0xff]  ;;  %s2968_s16 = scalar_lea.vmem [#allocation7], %s2046_s21  ;;  %s2272_s12 = smov [#allocation7]  }
  0x5a   : > { %v1565_v8 = vpack.c.bf16 %v247_v6, %v232_v5  ;;  %v263_v11 = vld [vmem:[%s2455_s29 + $0xf8] sm:$0xff]  ;;  %1564 = vmatprep.subr.bf16.mxu0 %v1563_v3  ;;  %v1629_v12 = vpack.c.bf16 %v249_v10, %v234_v9  ;;  %v278_v13 = vld [vmem:[%s2455_s29 + $0x170] sm:$0xff]  ;;  %v265_v14 = vld [vmem:[%s2455_s29 + $0x108] sm:$0xff]  ;;  %s1399_s30 = sshll.u32 %s2968_s16, 4  ;;  %s2978_s7 = scalar_lea.hbm %s3029_s2, %s2047_s19  ;;  %s2980_s30 = int_to_ptr.vmem [resolvable:$true] %s1399_s30 }
  0x5b   : > { %v280_v15 = vld [vmem:[%s2455_s29 + $0x180] sm:$0xff]  ;;  %1628 = vmatprep.subr.bf16.mxu1 %v1627_v7  ;;  %v1567_v16 = vpack.c.bf16 %v278_v13, %v263_v11  ;;  %v262_v18 = vld [vmem:[%s2455_s29 + $0xf0] sm:$0xff]  ;;  %v277_v19 = vld [vmem:[%s2455_s29 + $0x168] sm:$0xff]  ;;  %s2179_s15 = scalar_lea.vmem %s2980_s30, 480  ;;  %s2183_s18 = sshll.u32 %s2272_s12, 4  ;;  %s2184_s18 = int_to_ptr.vmem [resolvable:$false] %s2183_s18 }
  0x5c   : > { %1566 = vmatpush1.bf16.msra.mxu0 %v1565_v8  ;;  %v1631_v17 = vpack.c.bf16 %v280_v15, %v265_v14  ;;  %v264_v20 = vld [vmem:[%s2455_s29 + $0x100] sm:$0xff]  ;;  %1630 = vmatpush1.bf16.msra.mxu1 %v1629_v12  ;;  %v1569_v21 = vpack.c.bf16 %v277_v19, %v262_v18  ;;  %v279_v22 = vld [vmem:[%s2455_s29 + $0x178] sm:$0xff]  ;;  %v293_v23 = vld [vmem:[%s2455_s29 + $0x1e8] sm:$0xff]  ;;  %p2180_p13 = scmp.ne.s32.totalorder %s2980_s30, %s2179_s15  ;;  %s2185_s4 = scalar_lea.vmem %s2184_s18, 960 }
  0x5d   : > { %v308_v24 = vld [vmem:[%s2455_s29 + $0x260] sm:$0xff]  ;;  %1568 = vmatprep.subr.bf16.mxu0 %v1567_v16  ;;  %v1633_v25 = vpack.c.bf16 %v279_v22, %v264_v20  ;;  %v295_v27 = vld [vmem:[%s2455_s29 + $0x1f8] sm:$0xff]  ;;  %v310_v28 = vld [vmem:[%s2455_s29 + $0x270] sm:$0xff]  ;;  %p2186_p7 = scmp.lt.s32.totalorder %s2980_s30, %s2184_s18  ;;  %p2187_p10 = scmp.lt.s32.totalorder %s2185_s4, %s2179_s15 }
  0x5e   : > { %1632 = vmatprep.subr.bf16.mxu1 %v1631_v17  ;;  %v1571_v26 = vpack.c.bf16 %v308_v24, %v293_v23  ;;  %v292_v29 = vld [vmem:[%s2455_s29 + $0x1e0] sm:$0xff]  ;;  %v1635_v30 = vpack.c.bf16 %v310_v28, %v295_v27  ;;  %v307_v31 = vld [vmem:[%s2455_s29 + $0x258] sm:$0xff]  ;;  %v294_v32 = vld [vmem:[%s2455_s29 + $0x1f0] sm:$0xff]  ;;  %p2181_p6 = pnand %p2180_p13, %p3041_p3 }
  0x5f   : > { %v309_v33 = vld [vmem:[%s2455_s29 + $0x268] sm:$0xff]  ;;  %v1573_v34 = vpack.c.bf16 %v307_v31, %v292_v29  ;;  %v323_v35 = vld [vmem:[%s2455_s29 + $0x2d8] sm:$0xff]  ;;  %v338_v36 = vld [vmem:[%s2455_s29 + $0x350] sm:$0xff]  ;;  %p2188_p0 = por %p2187_p10, %p2186_p7 }
  0x60   : > { %1570 = vmatpush1.bf16.msra.mxu0 %v1569_v21  ;;  %v325_v37 = vld [vmem:[%s2455_s29 + $0x2e8] sm:$0xff]  ;;  %1634 = vmatpush1.bf16.msra.mxu1 %v1633_v25  ;;  %v1637_v38 = vpack.c.bf16 %v309_v33, %v294_v32  ;;  %v1575_v39 = vpack.c.bf16 %v338_v36, %v323_v35  ;;  %v340_v40 = vld [vmem:[%s2455_s29 + $0x360] sm:$0xff]  ;;  %v322_v41 = vld [vmem:[%s2455_s29 + $0x2d0] sm:$0xff]  ;;  %p2182_p12 = pneg %p2181_p6 }
  0x61   : > { %1572 = vmatprep.subr.bf16.mxu0 %v1571_v26  ;;  %v337_v42 = vld [vmem:[%s2455_s29 + $0x348] sm:$0xff]  ;;  %1636 = vmatprep.subr.bf16.mxu1 %v1635_v30  ;;  %v1639_v43 = vpack.c.bf16 %v340_v40, %v325_v37  ;;  %v324_v44 = vld [vmem:[%s2455_s29 + $0x2e0] sm:$0xff]  ;;  %v339_v45 = vld [vmem:[%s2455_s29 + $0x358] sm:$0xff] }
  0x62   : > { %v353_v46 = vld [vmem:[%s2455_s29 + $0x3c8] sm:$0xff]  ;;  %v368_v47 = vld [vmem:[%s2455_s29 + $0x440] sm:$0xff]  ;;  %v355_v48 = vld [vmem:[%s2455_s29 + $0x3d8] sm:$0xff]  ;;  %v1577_v50 = vpack.c.bf16 %v337_v42, %v322_v41  ;;  %v1641_v51 = vpack.c.bf16 %v339_v45, %v324_v44  ;;  %p2189_p1 = pnand %p2188_p0, %p2182_p12 }
  0x63   : > { %v370_v49 = vld [vmem:[%s2455_s29 + $0x450] sm:$0xff]  ;;  %v1579_v52 = vpack.c.bf16 %v368_v47, %v353_v46  ;;  %v352_v53 = vld [vmem:[%s2455_s29 + $0x3c0] sm:$0xff]  ;;  %v367_v54 = vld [vmem:[%s2455_s29 + $0x438] sm:$0xff] }
  0x64   : > { %1574 = vmatpush1.bf16.msra.mxu0 %v1573_v34  ;;  %1638 = vmatpush1.bf16.msra.mxu1 %v1637_v38  ;;  %v354_v55 = vld [vmem:[%s2455_s29 + $0x3d0] sm:$0xff]  ;;  %v1643_v56 = vpack.c.bf16 %v370_v49, %v355_v48  ;;  %v369_v57 = vld [vmem:[%s2455_s29 + $0x448] sm:$0xff]  ;;  %v383_v58 = vld [vmem:[%s2455_s29 + $0x4b8] sm:$0xff]  ;;  %v1581_v62 = vpack.c.bf16 %v367_v54, %v352_v53 }
  0x65   : > { %1576 = vmatprep.subr.bf16.mxu0 %v1575_v39  ;;  %1640 = vmatprep.subr.bf16.mxu1 %v1639_v43  ;;  %v398_v59 = vld [vmem:[%s2455_s29 + $0x530] sm:$0xff]  ;;  %v385_v60 = vld [vmem:[%s2455_s29 + $0x4c8] sm:$0xff]  ;;  %v400_v61 = vld [vmem:[%s2455_s29 + $0x540] sm:$0xff]  ;;  %v1645_v63 = vpack.c.bf16 %v369_v57, %v354_v55 }
  0x66   : > { %v1583_v0 = vpack.c.bf16 %v398_v59, %v383_v58  ;;  %v382_v1 = vld [vmem:[%s2455_s29 + $0x4b0] sm:$0xff]  ;;  %v397_v2 = vld [vmem:[%s2455_s29 + $0x528] sm:$0xff]  ;;  %v384_v3 = vld [vmem:[%s2455_s29 + $0x4c0] sm:$0xff]  ;;  %v1647_v4 = vpack.c.bf16 %v400_v61, %v385_v60 }
  0x67   : > { %v399_v5 = vld [vmem:[%s2455_s29 + $0x538] sm:$0xff]  ;;  %v413_v6 = vld [vmem:[%s2455_s29 + $0x5a8] sm:$0xff]  ;;  %v428_v7 = vld [vmem:[%s2455_s29 + $0x620] sm:$0xff]  ;;  %v1585_v10 = vpack.c.bf16 %v397_v2, %v382_v1 }
  0x68   : > { %1578 = vmatpush1.bf16.msra.mxu0 %v1577_v50  ;;  %1642 = vmatpush1.bf16.msra.mxu1 %v1641_v51  ;;  %v415_v8 = vld [vmem:[%s2455_s29 + $0x5b8] sm:$0xff]  ;;  %v430_v9 = vld [vmem:[%s2455_s29 + $0x630] sm:$0xff]  ;;  %v1649_v11 = vpack.c.bf16 %v399_v5, %v384_v3  ;;  %v1587_v12 = vpack.c.bf16 %v428_v7, %v413_v6  ;;  %v412_v13 = vld [vmem:[%s2455_s29 + $0x5a0] sm:$0xff] }
  0x69   : > { %1580 = vmatprep.subr.bf16.mxu0 %v1579_v52  ;;  %1644 = vmatprep.subr.bf16.mxu1 %v1643_v56  ;;  %v427_v14 = vld [vmem:[%s2455_s29 + $0x618] sm:$0xff]  ;;  %v414_v15 = vld [vmem:[%s2455_s29 + $0x5b0] sm:$0xff]  ;;  %v1651_v16 = vpack.c.bf16 %v430_v9, %v415_v8  ;;  %v429_v17 = vld [vmem:[%s2455_s29 + $0x628] sm:$0xff] }
  0x6a   : > { %v443_v18 = vld [vmem:[%s2455_s29 + $0x698] sm:$0xff]  ;;  %v458_v19 = vld [vmem:[%s2455_s29 + $0x710] sm:$0xff]  ;;  %v445_v20 = vld [vmem:[%s2455_s29 + $0x6a8] sm:$0xff]  ;;  %v1589_v22 = vpack.c.bf16 %v427_v14, %v412_v13  ;;  %v1653_v23 = vpack.c.bf16 %v429_v17, %v414_v15 }
  0x6b   : > { %v460_v21 = vld [vmem:[%s2455_s29 + $0x720] sm:$0xff]  ;;  %v1591_v24 = vpack.c.bf16 %v458_v19, %v443_v18  ;;  %v442_v25 = vld [vmem:[%s2455_s29 + $0x690] sm:$0xff]  ;;  %v457_v26 = vld [vmem:[%s2455_s29 + $0x708] sm:$0xff] }
  0x6c   : > { %1582 = vmatpush1.bf16.msra.mxu0 %v1581_v62  ;;  %1646 = vmatpush1.bf16.msra.mxu1 %v1645_v63  ;;  %v444_v27 = vld [vmem:[%s2455_s29 + $0x6a0] sm:$0xff]  ;;  %v1655_v28 = vpack.c.bf16 %v460_v21, %v445_v20  ;;  %v459_v29 = vld [vmem:[%s2455_s29 + $0x718] sm:$0xff]  ;;  %v473_v30 = vld [vmem:[%s2455_s29 + $0x788] sm:$0xff]  ;;  %v1593_v34 = vpack.c.bf16 %v457_v26, %v442_v25 }
  0x6d   : > { %1584 = vmatprep.subr.bf16.mxu0 %v1583_v0  ;;  %1648 = vmatprep.subr.bf16.mxu1 %v1647_v4  ;;  %v488_v31 = vld [vmem:[%s2455_s29 + $0x800] sm:$0xff]  ;;  %v475_v32 = vld [vmem:[%s2455_s29 + $0x798] sm:$0xff]  ;;  %v490_v33 = vld [vmem:[%s2455_s29 + $0x810] sm:$0xff]  ;;  %v1657_v35 = vpack.c.bf16 %v459_v29, %v444_v27 }
  0x6e   : > { %v1595_v36 = vpack.c.bf16 %v488_v31, %v473_v30  ;;  %v472_v37 = vld [vmem:[%s2455_s29 + $0x780] sm:$0xff]  ;;  %v487_v38 = vld [vmem:[%s2455_s29 + $0x7f8] sm:$0xff]  ;;  %v474_v39 = vld [vmem:[%s2455_s29 + $0x790] sm:$0xff]  ;;  %v1659_v40 = vpack.c.bf16 %v490_v33, %v475_v32 }
  0x6f   : > { %v489_v41 = vld [vmem:[%s2455_s29 + $0x808] sm:$0xff]  ;;  %v503_v42 = vld [vmem:[%s2455_s29 + $0x878] sm:$0xff]  ;;  %v518_v43 = vld [vmem:[%s2455_s29 + $0x8f0] sm:$0xff]  ;;  %v1597_v46 = vpack.c.bf16 %v487_v38, %v472_v37 }
  0x70   : > { %1586 = vmatpush1.bf16.msra.mxu0 %v1585_v10  ;;  %1650 = vmatpush1.bf16.msra.mxu1 %v1649_v11  ;;  %v505_v44 = vld [vmem:[%s2455_s29 + $0x888] sm:$0xff]  ;;  %v520_v45 = vld [vmem:[%s2455_s29 + $0x900] sm:$0xff]  ;;  %v1661_v47 = vpack.c.bf16 %v489_v41, %v474_v39  ;;  %v1599_v48 = vpack.c.bf16 %v518_v43, %v503_v42  ;;  %v502_v49 = vld [vmem:[%s2455_s29 + $0x870] sm:$0xff] }
  0x71   : > { %1588 = vmatprep.subr.bf16.mxu0 %v1587_v12  ;;  %1652 = vmatprep.subr.bf16.mxu1 %v1651_v16  ;;  %v517_v50 = vld [vmem:[%s2455_s29 + $0x8e8] sm:$0xff]  ;;  %v504_v51 = vld [vmem:[%s2455_s29 + $0x880] sm:$0xff]  ;;  %v1663_v52 = vpack.c.bf16 %v520_v45, %v505_v44  ;;  %v519_v53 = vld [vmem:[%s2455_s29 + $0x8f8] sm:$0xff] }
  0x72   : > { %v533_v54 = vld [vmem:[%s2455_s29 + $0x968] sm:$0xff]  ;;  %v548_v55 = vld [vmem:[%s2455_s29 + $0x9e0] sm:$0xff]  ;;  %v535_v56 = vld [vmem:[%s2455_s29 + $0x978] sm:$0xff]  ;;  %v1601_v58 = vpack.c.bf16 %v517_v50, %v502_v49  ;;  %v1665_v59 = vpack.c.bf16 %v519_v53, %v504_v51 }
  0x73   : > { %v550_v57 = vld [vmem:[%s2455_s29 + $0x9f0] sm:$0xff]  ;;  %v1603_v60 = vpack.c.bf16 %v548_v55, %v533_v54  ;;  %v532_v61 = vld [vmem:[%s2455_s29 + $0x960] sm:$0xff]  ;;  %v547_v62 = vld [vmem:[%s2455_s29 + $0x9d8] sm:$0xff] }
  0x74   : > { %1590 = vmatpush1.bf16.msra.mxu0 %v1589_v22  ;;  %1654 = vmatpush1.bf16.msra.mxu1 %v1653_v23  ;;  %v534_v63 = vld [vmem:[%s2455_s29 + $0x970] sm:$0xff]  ;;  %v1667_v0 = vpack.c.bf16 %v550_v57, %v535_v56  ;;  %v549_v1 = vld [vmem:[%s2455_s29 + $0x9e8] sm:$0xff]  ;;  %v563_v2 = vld [vmem:[%s2455_s29 + $0xa58] sm:$0xff]  ;;  %v1605_v6 = vpack.c.bf16 %v547_v62, %v532_v61 }
  0x75   : > { %1592 = vmatprep.subr.bf16.mxu0 %v1591_v24  ;;  %1656 = vmatprep.subr.bf16.mxu1 %v1655_v28  ;;  %v578_v3 = vld [vmem:[%s2455_s29 + $0xad0] sm:$0xff]  ;;  %v565_v4 = vld [vmem:[%s2455_s29 + $0xa68] sm:$0xff]  ;;  %v580_v5 = vld [vmem:[%s2455_s29 + $0xae0] sm:$0xff]  ;;  %v1669_v8 = vpack.c.bf16 %v549_v1, %v534_v63 }
  0x76   : > { %v562_v7 = vld [vmem:[%s2455_s29 + $0xa50] sm:$0xff]  ;;  %v1607_v9 = vpack.c.bf16 %v578_v3, %v563_v2  ;;  %v577_v10 = vld [vmem:[%s2455_s29 + $0xac8] sm:$0xff]  ;;  %v564_v11 = vld [vmem:[%s2455_s29 + $0xa60] sm:$0xff]  ;;  %v1671_v13 = vpack.c.bf16 %v580_v5, %v565_v4 }
  0x77   : > { %v579_v12 = vld [vmem:[%s2455_s29 + $0xad8] sm:$0xff]  ;;  %v593_v14 = vld [vmem:[%s2455_s29 + $0xb48] sm:$0xff]  ;;  %v608_v15 = vld [vmem:[%s2455_s29 + $0xbc0] sm:$0xff]  ;;  %v1609_v20 = vpack.c.bf16 %v577_v10, %v562_v7 }
  0x78   : > { %1594 = vmatpush1.bf16.msra.mxu0 %v1593_v34  ;;  %1658 = vmatpush1.bf16.msra.mxu1 %v1657_v35  ;;  %v2560_v16 = vld.sshfl [vmem:[%s2447_s27] sm:$0x33 pattern:$0x76325410]  ;;  %v610_v18 = vld [vmem:[%s2455_s29 + $0xbd0] sm:$0xff]  ;;  %v1673_v21 = vpack.c.bf16 %v579_v12, %v564_v11  ;;  %v1611_v22 = vpack.c.bf16 %v608_v15, %v593_v14  ;;  %v592_v23 = vld [vmem:[%s2455_s29 + $0xb40] sm:$0xff] }
  0x79   : > { %1596 = vmatprep.subr.bf16.mxu0 %v1595_v36  ;;  %1660 = vmatprep.subr.bf16.mxu1 %v1659_v40  ;;  %v595_v17 = vld [vmem:[%s2455_s29 + $0xb58] sm:$0xff]  ;;  %v2566_v19 = vcombine.high %v2560_v16, %v2560_v16  ;;  %v594_v25 = vld [vmem:[%s2455_s29 + $0xb50] sm:$0xff]  ;;  %v609_v27 = vld [vmem:[%s2455_s29 + $0xbc8] sm:$0xff] }
  0x7a   : > { %v607_v24 = vld [vmem:[%s2455_s29 + $0xbb8] sm:$0xff]  ;;  %v1675_v26 = vpack.c.bf16 %v610_v18, %v595_v17  ;;  %v638_v29 = vld [vmem:[%s2455_s29 + $0xcb0] sm:$0xff]  ;;  %v625_v30 = vld [vmem:[%s2455_s29 + $0xc48] sm:$0xff]  ;;  %v1677_v33 = vpack.c.bf16 %v609_v27, %v594_v25 }
  0x7b   : > { %v623_v28 = vld [vmem:[%s2455_s29 + $0xc38] sm:$0xff]  ;;  %787 = vmatprep.mubr.f32.mxu0 %v2566_v19  ;;  %v640_v31 = vld [vmem:[%s2455_s29 + $0xcc0] sm:$0xff]  ;;  %858 = vmatprep.mubr.f32.mxu1 %v2566_v19  ;;  %v1613_v32 = vpack.c.bf16 %v607_v24, %v592_v23  ;;  %v622_v35 = vld [vmem:[%s2455_s29 + $0xc30] sm:$0xff] }
  0x7c   : > { %1598 = vmatpush1.bf16.msra.mxu0 %v1597_v46  ;;  %1662 = vmatpush1.bf16.msra.mxu1 %v1661_v47  ;;  %v1615_v34 = vpack.c.bf16 %v638_v29, %v623_v28  ;;  %v637_v36 = vld [vmem:[%s2455_s29 + $0xca8] sm:$0xff]  ;;  %v624_v37 = vld [vmem:[%s2455_s29 + $0xc40] sm:$0xff]  ;;  %v1679_v38 = vpack.c.bf16 %v640_v31, %v625_v30  ;;  %v639_v39 = vld [vmem:[%s2455_s29 + $0xcb8] sm:$0xff] }
  0x7d   : > { %1600 = vmatprep.subr.bf16.mxu0 %v1599_v48  ;;  %1664 = vmatprep.subr.bf16.mxu1 %v1663_v52  ;;  %v653_v40 = vld [vmem:[%s2455_s29 + $0xd28] sm:$0xff]  ;;  %v668_v41 = vld [vmem:[%s2455_s29 + $0xda0] sm:$0xff]  ;;  %v655_v42 = vld [vmem:[%s2455_s29 + $0xd38] sm:$0xff]  ;;  %v1617_v44 = vpack.c.bf16 %v637_v36, %v622_v35  ;;  %v1681_v45 = vpack.c.bf16 %v639_v39, %v624_v37 }
  0x7e   : > { %v670_v43 = vld [vmem:[%s2455_s29 + $0xdb0] sm:$0xff]  ;;  %v1619_v46 = vpack.c.bf16 %v668_v41, %v653_v40  ;;  %v652_v47 = vld [vmem:[%s2455_s29 + $0xd20] sm:$0xff]  ;;  %v667_v48 = vld [vmem:[%s2455_s29 + $0xd98] sm:$0xff] }
  0x7f   : > { %v654_v49 = vld [vmem:[%s2455_s29 + $0xd30] sm:$0xff]  ;;  %v1683_v50 = vpack.c.bf16 %v670_v43, %v655_v42  ;;  %v669_v51 = vld [vmem:[%s2455_s29 + $0xda8] sm:$0xff]  ;;  %v683_v52 = vld [vmem:[%s2455_s29 + $0xe18] sm:$0xff]  ;;  %v1621_v56 = vpack.c.bf16 %v667_v48, %v652_v47 }
  0x80   : > { %1602 = vmatpush1.bf16.msra.mxu0 %v1601_v58  ;;  %1666 = vmatpush1.bf16.msra.mxu1 %v1665_v59  ;;  %v698_v53 = vld [vmem:[%s2455_s29 + $0xe90] sm:$0xff]  ;;  %v685_v54 = vld [vmem:[%s2455_s29 + $0xe28] sm:$0xff]  ;;  %v700_v55 = vld [vmem:[%s2455_s29 + $0xea0] sm:$0xff]  ;;  %v1685_v57 = vpack.c.bf16 %v669_v51, %v654_v49 }
  0x81   : > { %1604 = vmatprep.subr.bf16.mxu0 %v1603_v60  ;;  %1668 = vmatprep.subr.bf16.mxu1 %v1667_v0  ;;  %v1623_v58 = vpack.c.bf16 %v698_v53, %v683_v52  ;;  %v682_v59 = vld [vmem:[%s2455_s29 + $0xe10] sm:$0xff]  ;;  %v697_v60 = vld [vmem:[%s2455_s29 + $0xe88] sm:$0xff]  ;;  %v684_v61 = vld [vmem:[%s2455_s29 + $0xe20] sm:$0xff]  ;;  %v1687_v62 = vpack.c.bf16 %v700_v55, %v685_v54 }
  0x82   : > { %v699_v63 = vld [vmem:[%s2455_s29 + $0xe98] sm:$0xff]  ;;  %v237_v0 = vld [vmem:[%s2455_s29 + $0x28] sm:$0xff]  ;;  %v252_v1 = vld [vmem:[%s2455_s29 + $0xa0] sm:$0xff]  ;;  %v1625_v4 = vpack.c.bf16 %v697_v60, %v682_v59 }
  0x83   : > { %v239_v2 = vld [vmem:[%s2455_s29 + $0x38] sm:$0xff]  ;;  %v254_v3 = vld [vmem:[%s2455_s29 + $0xb0] sm:$0xff]  ;;  %v1689_v5 = vpack.c.bf16 %v699_v63, %v684_v61  ;;  %v236_v7 = vld [vmem:[%s2455_s29 + $0x20] sm:$0xff] }
  0x84   : > { %1606 = vmatpush1.bf16.msra.mxu0 %v1605_v6  ;;  %1670 = vmatpush1.bf16.msra.mxu1 %v1669_v8  ;;  %v1691_v6 = vpack.c.bf16 %v252_v1, %v237_v0  ;;  %v251_v8 = vld [vmem:[%s2455_s29 + $0x98] sm:$0xff]  ;;  %v1755_v10 = vpack.c.bf16 %v254_v3, %v239_v2  ;;  %v253_v11 = vld [vmem:[%s2455_s29 + $0xa8] sm:$0xff]  ;;  %v284_v15 = vld [vmem:[%s2455_s29 + $0x1a0] sm:$0xff] }
  0x85   : > { %1608 = vmatprep.subr.bf16.mxu0 %v1607_v9  ;;  %1672 = vmatprep.subr.bf16.mxu1 %v1671_v13  ;;  %v238_v9 = vld [vmem:[%s2455_s29 + $0x30] sm:$0xff]  ;;  %v267_v12 = vld [vmem:[%s2455_s29 + $0x118] sm:$0xff]  ;;  %v269_v14 = vld [vmem:[%s2455_s29 + $0x128] sm:$0xff]  ;;  %v1693_v17 = vpack.c.bf16 %v251_v8, %v236_v7 }
  0x86   : > { %v282_v13 = vld [vmem:[%s2455_s29 + $0x190] sm:$0xff]  ;;  %v1757_v18 = vpack.c.bf16 %v253_v11, %v238_v9  ;;  %v268_v23 = vld [vmem:[%s2455_s29 + $0x120] sm:$0xff]  ;;  %v1759_v24 = vpack.c.bf16 %v284_v15, %v269_v14  ;;  %v283_v25 = vld [vmem:[%s2455_s29 + $0x198] sm:$0xff] }
  0x87   : > { %v312_v27 = vld [vmem:[%s2455_s29 + $0x280] sm:$0xff]  ;;  %v299_v28 = vld [vmem:[%s2455_s29 + $0x218] sm:$0xff]  ;;  %v314_v29 = vld [vmem:[%s2455_s29 + $0x290] sm:$0xff]  ;;  %v1761_v31 = vpack.c.bf16 %v283_v25, %v268_v23 }
  0x88   : > { %1610 = vmatpush1.bf16.msra.mxu0 %v1609_v20  ;;  %1674 = vmatpush1.bf16.msra.mxu1 %v1673_v21  ;;  %v1695_v20 = vpack.c.bf16 %v282_v13, %v267_v12  ;;  %v266_v21 = vld [vmem:[%s2455_s29 + $0x110] sm:$0xff]  ;;  %v1763_v36 = vpack.c.bf16 %v314_v29, %v299_v28  ;;  %v313_v37 = vld [vmem:[%s2455_s29 + $0x288] sm:$0xff]  ;;  %v344_v41 = vld [vmem:[%s2455_s29 + $0x380] sm:$0xff] }
  0x89   : > { %1612 = vmatprep.subr.bf16.mxu0 %v1611_v22  ;;  %1676 = vmatprep.subr.bf16.mxu1 %v1675_v26  ;;  %v281_v22 = vld [vmem:[%s2455_s29 + $0x188] sm:$0xff]  ;;  %v298_v35 = vld [vmem:[%s2455_s29 + $0x210] sm:$0xff]  ;;  %v328_v47 = vld [vmem:[%s2455_s29 + $0x300] sm:$0xff] }
  0x8a   : > { %v297_v26 = vld [vmem:[%s2455_s29 + $0x208] sm:$0xff]  ;;  %v1697_v30 = vpack.c.bf16 %v281_v22, %v266_v21  ;;  %v342_v39 = vld [vmem:[%s2455_s29 + $0x370] sm:$0xff]  ;;  %v1765_v43 = vpack.c.bf16 %v313_v37, %v298_v35  ;;  %v343_v49 = vld [vmem:[%s2455_s29 + $0x378] sm:$0xff] }
  0x8b   : > { %v329_v40 = vld [vmem:[%s2455_s29 + $0x308] sm:$0xff]  ;;  %v372_v51 = vld [vmem:[%s2455_s29 + $0x460] sm:$0xff]  ;;  %v359_v52 = vld [vmem:[%s2455_s29 + $0x3f8] sm:$0xff]  ;;  %v1769_v55 = vpack.c.bf16 %v343_v49, %v328_v47 }
  0x8c   : > { %1614 = vmatpush1.bf16.msra.mxu0 %v1613_v32  ;;  %1678 = vmatpush1.bf16.msra.mxu1 %v1677_v33  ;;  %v1699_v32 = vpack.c.bf16 %v312_v27, %v297_v26  ;;  %v296_v33 = vld [vmem:[%s2455_s29 + $0x200] sm:$0xff]  ;;  %v1767_v48 = vpack.c.bf16 %v344_v41, %v329_v40  ;;  %v374_v53 = vld [vmem:[%s2455_s29 + $0x470] sm:$0xff]  ;;  %v373_v61 = vld [vmem:[%s2455_s29 + $0x468] sm:$0xff] }
  0x8d   : > { %1616 = vmatprep.subr.bf16.mxu0 %v1615_v34  ;;  %1680 = vmatprep.subr.bf16.mxu1 %v1679_v38  ;;  %v311_v34 = vld [vmem:[%s2455_s29 + $0x278] sm:$0xff]  ;;  %v358_v59 = vld [vmem:[%s2455_s29 + $0x3f0] sm:$0xff]  ;;  %v1771_v60 = vpack.c.bf16 %v374_v53, %v359_v52  ;;  %v389_v0 = vld [vmem:[%s2455_s29 + $0x4e8] sm:$0xff] }
  0x8e   : > { %v327_v38 = vld [vmem:[%s2455_s29 + $0x2f8] sm:$0xff]  ;;  %v1701_v42 = vpack.c.bf16 %v311_v34, %v296_v33  ;;  %v402_v63 = vld [vmem:[%s2455_s29 + $0x550] sm:$0xff]  ;;  %v404_v1 = vld [vmem:[%s2455_s29 + $0x560] sm:$0xff]  ;;  %v1773_v3 = vpack.c.bf16 %v373_v61, %v358_v59 }
  0x8f   : > { %v388_v7 = vld [vmem:[%s2455_s29 + $0x4e0] sm:$0xff]  ;;  %v1775_v8 = vpack.c.bf16 %v404_v1, %v389_v0  ;;  %v403_v9 = vld [vmem:[%s2455_s29 + $0x558] sm:$0xff]  ;;  %v434_v13 = vld [vmem:[%s2455_s29 + $0x650] sm:$0xff] }
  0x90   : > { %1618 = vmatpush1.bf16.msra.mxu0 %v1617_v44  ;;  %1682 = vmatpush1.bf16.msra.mxu1 %v1681_v45  ;;  %v1703_v44 = vpack.c.bf16 %v342_v39, %v327_v38  ;;  %v326_v45 = vld [vmem:[%s2455_s29 + $0x2f0] sm:$0xff]  ;;  %v432_v11 = vld [vmem:[%s2455_s29 + $0x640] sm:$0xff]  ;;  %v419_v12 = vld [vmem:[%s2455_s29 + $0x5d8] sm:$0xff]  ;;  %v1777_v15 = vpack.c.bf16 %v403_v9, %v388_v7 }
  0x91   : > { %1620 = vmatprep.subr.bf16.mxu0 %v1619_v46  ;;  %1684 = vmatprep.subr.bf16.mxu1 %v1683_v50  ;;  %v341_v46 = vld [vmem:[%s2455_s29 + $0x368] sm:$0xff]  ;;  %v418_v21 = vld [vmem:[%s2455_s29 + $0x5d0] sm:$0xff]  ;;  %v1779_v22 = vpack.c.bf16 %v434_v13, %v419_v12  ;;  %v464_v27 = vld [vmem:[%s2455_s29 + $0x740] sm:$0xff] }
  0x92   : > { %v357_v50 = vld [vmem:[%s2455_s29 + $0x3e8] sm:$0xff]  ;;  %v1705_v54 = vpack.c.bf16 %v341_v46, %v326_v45  ;;  %v462_v25 = vld [vmem:[%s2455_s29 + $0x730] sm:$0xff]  ;;  %v448_v33 = vld [vmem:[%s2455_s29 + $0x6c0] sm:$0xff] }
  0x93   : > { %v433_v23 = vld [vmem:[%s2455_s29 + $0x648] sm:$0xff]  ;;  %v463_v35 = vld [vmem:[%s2455_s29 + $0x738] sm:$0xff]  ;;  %v492_v37 = vld [vmem:[%s2455_s29 + $0x820] sm:$0xff] }
  0x94   : > { %1622 = vmatpush1.bf16.msra.mxu0 %v1621_v56  ;;  %1686 = vmatpush1.bf16.msra.mxu1 %v1685_v57  ;;  %v1707_v56 = vpack.c.bf16 %v372_v51, %v357_v50  ;;  %v356_v57 = vld [vmem:[%s2455_s29 + $0x3e0] sm:$0xff]  ;;  %v449_v26 = vld [vmem:[%s2455_s29 + $0x6c8] sm:$0xff]  ;;  %v1781_v29 = vpack.c.bf16 %v433_v23, %v418_v21  ;;  %v479_v38 = vld [vmem:[%s2455_s29 + $0x7b8] sm:$0xff]  ;;  %v1785_v41 = vpack.c.bf16 %v463_v35, %v448_v33 }
  0x95   : > { %1624 = vmatprep.subr.bf16.mxu0 %v1623_v58  ;;  %1688 = vmatprep.subr.bf16.mxu1 %v1687_v62  ;;  %v371_v58 = vld [vmem:[%s2455_s29 + $0x458] sm:$0xff]  ;;  %v1783_v34 = vpack.c.bf16 %v464_v27, %v449_v26  ;;  %v494_v39 = vld [vmem:[%s2455_s29 + $0x830] sm:$0xff]  ;;  %v493_v47 = vld [vmem:[%s2455_s29 + $0x828] sm:$0xff] }
  0x96   : > { %v387_v62 = vld [vmem:[%s2455_s29 + $0x4d8] sm:$0xff]  ;;  %v1709_v2 = vpack.c.bf16 %v371_v58, %v356_v57  ;;  %v478_v45 = vld [vmem:[%s2455_s29 + $0x7b0] sm:$0xff]  ;;  %v1787_v46 = vpack.c.bf16 %v494_v39, %v479_v38  ;;  %v509_v50 = vld [vmem:[%s2455_s29 + $0x8a8] sm:$0xff] }
  0x97   : > { %v522_v49 = vld [vmem:[%s2455_s29 + $0x910] sm:$0xff]  ;;  %v524_v51 = vld [vmem:[%s2455_s29 + $0x920] sm:$0xff]  ;;  %v1789_v53 = vpack.c.bf16 %v493_v47, %v478_v45  ;;  %v523_v59 = vld [vmem:[%s2455_s29 + $0x918] sm:$0xff] }
  0x98   : > { %1626 = vmatpush1.bf16.msra.mxu0 %v1625_v4  ;;  %1690 = vmatpush1.bf16.msra.mxu1 %v1689_v5  ;;  %v1711_v4 = vpack.c.bf16 %v402_v63, %v387_v62  ;;  %v386_v5 = vld [vmem:[%s2455_s29 + $0x4d0] sm:$0xff]  ;;  %v508_v57 = vld [vmem:[%s2455_s29 + $0x8a0] sm:$0xff]  ;;  %v1791_v58 = vpack.c.bf16 %v524_v51, %v509_v50  ;;  %v539_v62 = vld [vmem:[%s2455_s29 + $0x998] sm:$0xff] }
  0x99   : > { %1692 = vmatprep.subr.bf16.mxu0 %v1691_v6  ;;  %1756 = vmatprep.subr.bf16.mxu1 %v1755_v10  ;;  %v401_v6 = vld [vmem:[%s2455_s29 + $0x548] sm:$0xff]  ;;  %v552_v61 = vld [vmem:[%s2455_s29 + $0xa00] sm:$0xff]  ;;  %v554_v63 = vld [vmem:[%s2455_s29 + $0xa10] sm:$0xff]  ;;  %v1793_v1 = vpack.c.bf16 %v523_v59, %v508_v57 }
  0x9a   : > { %v417_v10 = vld [vmem:[%s2455_s29 + $0x5c8] sm:$0xff]  ;;  %v1713_v14 = vpack.c.bf16 %v401_v6, %v386_v5  ;;  %v538_v5 = vld [vmem:[%s2455_s29 + $0x990] sm:$0xff]  ;;  %v1795_v6 = vpack.c.bf16 %v554_v63, %v539_v62  ;;  %v583_v21 = vld [vmem:[%s2455_s29 + $0xaf8] sm:$0xff] }
  0x9b   : > { %788 = vmatmul.mubr.f32.vlgmr.msra.gmra.mrb[0].mxu0 %v2560_v16  ;;  %859 = vmatmul.mubr.f32.vlgmr.msra.gmra.mrb[0].mxu1 %v2560_v16  ;;  %v553_v7 = vld [vmem:[%s2455_s29 + $0xa08] sm:$0xff]  ;;  %v582_v9 = vld [vmem:[%s2455_s29 + $0xaf0] sm:$0xff]  ;;  %v612_v23 = vld [vmem:[%s2455_s29 + $0xbe0] sm:$0xff] }
  0x9c   : > { %1694 = vmatpush1.bf16.msra.mxu0 %v1693_v17  ;;  %1758 = vmatpush1.bf16.msra.mxu1 %v1757_v18  ;;  %v1715_v17 = vpack.c.bf16 %v432_v11, %v417_v10  ;;  %v416_v18 = vld [vmem:[%s2455_s29 + $0x5c0] sm:$0xff]  ;;  %v569_v10 = vld [vmem:[%s2455_s29 + $0xa88] sm:$0xff]  ;;  %v1797_v13 = vpack.c.bf16 %v553_v7, %v538_v5  ;;  %v642_v35 = vld [vmem:[%s2455_s29 + $0xcd0] sm:$0xff] }
  0x9d   : > { %1696 = vmatprep.subr.bf16.mxu0 %v1695_v20  ;;  %1760 = vmatprep.subr.bf16.mxu1 %v1759_v24  ;;  %v431_v20 = vld [vmem:[%s2455_s29 + $0x638] sm:$0xff]  ;;  %v584_v11 = vld [vmem:[%s2455_s29 + $0xb00] sm:$0xff]  ;;  %v613_v33 = vld [vmem:[%s2455_s29 + $0xbe8] sm:$0xff] }
  0x9e   : > { %929 = vmatprep.mubr.f32.mxu0 %v2566_v19  ;;  %1000 = vmatprep.mubr.f32.mxu1 %v2566_v19  ;;  %v447_v24 = vld [vmem:[%s2455_s29 + $0x6b8] sm:$0xff]  ;;  %v1717_v28 = vpack.c.bf16 %v431_v20, %v416_v18  ;;  %v568_v18 = vld [vmem:[%s2455_s29 + $0xa80] sm:$0xff]  ;;  %v1799_v20 = vpack.c.bf16 %v584_v11, %v569_v10  ;;  %v673_v57 = vld [vmem:[%s2455_s29 + $0xdc8] sm:$0xff] }
  0x9f   : > { %v1801_v27 = vpack.c.bf16 %v583_v21, %v568_v18  ;;  %v643_v45 = vld [vmem:[%s2455_s29 + $0xcd8] sm:$0xff]  ;;  %v672_v47 = vld [vmem:[%s2455_s29 + $0xdc0] sm:$0xff]  ;;  %v702_v59 = vld [vmem:[%s2455_s29 + $0xeb0] sm:$0xff] }
  0xa0   : > { %1698 = vmatpush1.bf16.msra.mxu0 %v1697_v30  ;;  %1762 = vmatpush1.bf16.msra.mxu1 %v1761_v31  ;;  %v1719_v30 = vpack.c.bf16 %v462_v25, %v447_v24  ;;  %v446_v31 = vld [vmem:[%s2455_s29 + $0x6b0] sm:$0xff]  ;;  %v599_v24 = vld [vmem:[%s2455_s29 + $0xb78] sm:$0xff]  ;;  %v256_v7 = vld [vmem:[%s2455_s29 + $0xc0] sm:$0xff] }
  0xa1   : > { %1700 = vmatprep.subr.bf16.mxu0 %v1699_v32  ;;  %1764 = vmatprep.subr.bf16.mxu1 %v1763_v36  ;;  %v461_v32 = vld [vmem:[%s2455_s29 + $0x728] sm:$0xff]  ;;  %v614_v25 = vld [vmem:[%s2455_s29 + $0xbf0] sm:$0xff]  ;;  %v703_v5 = vld [vmem:[%s2455_s29 + $0xeb8] sm:$0xff] }
  0xa2   : > { %v477_v36 = vld [vmem:[%s2455_s29 + $0x7a8] sm:$0xff]  ;;  %v1721_v40 = vpack.c.bf16 %v461_v32, %v446_v31  ;;  %v598_v31 = vld [vmem:[%s2455_s29 + $0xb70] sm:$0xff]  ;;  %v1803_v32 = vpack.c.bf16 %v614_v25, %v599_v24 }
  0xa3   : > { %v1805_v39 = vpack.c.bf16 %v613_v33, %v598_v31  ;;  %v257_v18 = vld [vmem:[%s2455_s29 + $0xc8] sm:$0xff]  ;;  %v286_v21 = vld [vmem:[%s2455_s29 + $0x1b0] sm:$0xff]  ;;  %v287_v31 = vld [vmem:[%s2455_s29 + $0x1b8] sm:$0xff] }
  0xa4   : > { %1702 = vmatpush1.bf16.msra.mxu0 %v1701_v42  ;;  %1766 = vmatpush1.bf16.msra.mxu1 %v1765_v43  ;;  %v1723_v42 = vpack.c.bf16 %v492_v37, %v477_v36  ;;  %v476_v43 = vld [vmem:[%s2455_s29 + $0x7a0] sm:$0xff]  ;;  %v629_v36 = vld [vmem:[%s2455_s29 + $0xc68] sm:$0xff] }
  0xa5   : > { %1704 = vmatprep.subr.bf16.mxu0 %v1703_v44  ;;  %1768 = vmatprep.subr.bf16.mxu1 %v1767_v48  ;;  %v491_v44 = vld [vmem:[%s2455_s29 + $0x818] sm:$0xff]  ;;  %v644_v37 = vld [vmem:[%s2455_s29 + $0xce0] sm:$0xff] }
  0xa6   : > { %v507_v48 = vld [vmem:[%s2455_s29 + $0x898] sm:$0xff]  ;;  %v1725_v52 = vpack.c.bf16 %v491_v44, %v476_v43  ;;  %v628_v43 = vld [vmem:[%s2455_s29 + $0xc60] sm:$0xff]  ;;  %v1807_v44 = vpack.c.bf16 %v644_v37, %v629_v36 }
  0xa7   : > { %v1809_v51 = vpack.c.bf16 %v643_v45, %v628_v43  ;;  %v316_v33 = vld [vmem:[%s2455_s29 + $0x2a0] sm:$0xff]  ;;  %v317_v43 = vld [vmem:[%s2455_s29 + $0x2a8] sm:$0xff]  ;;  %v346_v45 = vld [vmem:[%s2455_s29 + $0x390] sm:$0xff] }
  0xa8   : > { %1706 = vmatpush1.bf16.msra.mxu0 %v1705_v54  ;;  %1770 = vmatpush1.bf16.msra.mxu1 %v1769_v55  ;;  %v1727_v54 = vpack.c.bf16 %v522_v49, %v507_v48  ;;  %v506_v55 = vld [vmem:[%s2455_s29 + $0x890] sm:$0xff]  ;;  %v659_v48 = vld [vmem:[%s2455_s29 + $0xd58] sm:$0xff] }
  0xa9   : > { %1708 = vmatprep.subr.bf16.mxu0 %v1707_v56  ;;  %1772 = vmatprep.subr.bf16.mxu1 %v1771_v60  ;;  %v521_v56 = vld [vmem:[%s2455_s29 + $0x908] sm:$0xff]  ;;  %v674_v49 = vld [vmem:[%s2455_s29 + $0xdd0] sm:$0xff] }
  0xaa   : > { %v537_v60 = vld [vmem:[%s2455_s29 + $0x988] sm:$0xff]  ;;  %v1729_v0 = vpack.c.bf16 %v521_v56, %v506_v55  ;;  %v658_v55 = vld [vmem:[%s2455_s29 + $0xd50] sm:$0xff]  ;;  %v1811_v56 = vpack.c.bf16 %v674_v49, %v659_v48 }
  0xab   : > { %v1813_v63 = vpack.c.bf16 %v673_v57, %v658_v55  ;;  %v361_v55 = vld [vmem:[%s2455_s29 + $0x408] sm:$0xff]  ;;  %v363_v57 = vld [vmem:[%s2455_s29 + $0x418] sm:$0xff] }
  0xac   : > { %1710 = vmatpush1.bf16.msra.mxu0 %v1709_v2  ;;  %1774 = vmatpush1.bf16.msra.mxu1 %v1773_v3  ;;  %v1731_v2 = vpack.c.bf16 %v552_v61, %v537_v60  ;;  %v536_v3 = vld [vmem:[%s2455_s29 + $0x980] sm:$0xff]  ;;  %v689_v60 = vld [vmem:[%s2455_s29 + $0xe48] sm:$0xff] }
  0xad   : > { %1712 = vmatprep.subr.bf16.mxu0 %v1711_v4  ;;  %1776 = vmatprep.subr.bf16.mxu1 %v1775_v8  ;;  %v551_v4 = vld [vmem:[%s2455_s29 + $0x9f8] sm:$0xff]  ;;  %v704_v61 = vld [vmem:[%s2455_s29 + $0xec0] sm:$0xff] }
  0xae   : > { %v567_v8 = vld [vmem:[%s2455_s29 + $0xa78] sm:$0xff]  ;;  %v1733_v12 = vpack.c.bf16 %v551_v4, %v536_v3  ;;  %v688_v3 = vld [vmem:[%s2455_s29 + $0xe40] sm:$0xff]  ;;  %v1815_v4 = vpack.c.bf16 %v704_v61, %v689_v60 }
  0xaf   : > { %v1817_v11 = vpack.c.bf16 %v703_v5, %v688_v3  ;;  %v391_v3 = vld [vmem:[%s2455_s29 + $0x4f8] sm:$0xff]  ;;  %v393_v5 = vld [vmem:[%s2455_s29 + $0x508] sm:$0xff] }
  0xb0   : > { %1714 = vmatpush1.bf16.msra.mxu0 %v1713_v14  ;;  %1778 = vmatpush1.bf16.msra.mxu1 %v1777_v15  ;;  %v1735_v14 = vpack.c.bf16 %v582_v9, %v567_v8  ;;  %v566_v15 = vld [vmem:[%s2455_s29 + $0xa70] sm:$0xff]  ;;  %v243_v8 = vld [vmem:[%s2455_s29 + $0x58] sm:$0xff] }
  0xb1   : > { %1716 = vmatprep.subr.bf16.mxu0 %v1715_v17  ;;  %1780 = vmatprep.subr.bf16.mxu1 %v1779_v22  ;;  %v581_v17 = vld [vmem:[%s2455_s29 + $0xae8] sm:$0xff]  ;;  %v258_v9 = vld [vmem:[%s2455_s29 + $0xd0] sm:$0xff] }
  0xb2   : > { %v597_v22 = vld [vmem:[%s2455_s29 + $0xb68] sm:$0xff]  ;;  %v1737_v26 = vpack.c.bf16 %v581_v17, %v566_v15  ;;  %v242_v15 = vld [vmem:[%s2455_s29 + $0x50] sm:$0xff]  ;;  %v1883_v17 = vpack.c.bf16 %v258_v9, %v243_v8 }
  0xb3   : > { %v1885_v25 = vpack.c.bf16 %v257_v18, %v242_v15  ;;  %v421_v15 = vld [vmem:[%s2455_s29 + $0x5e8] sm:$0xff]  ;;  %v423_v18 = vld [vmem:[%s2455_s29 + $0x5f8] sm:$0xff] }
  0xb4   : > { %1718 = vmatpush1.bf16.msra.mxu0 %v1717_v28  ;;  %1782 = vmatpush1.bf16.msra.mxu1 %v1781_v29  ;;  %v1739_v28 = vpack.c.bf16 %v612_v23, %v597_v22  ;;  %v596_v29 = vld [vmem:[%s2455_s29 + $0xb60] sm:$0xff]  ;;  %v273_v22 = vld [vmem:[%s2455_s29 + $0x148] sm:$0xff] }
  0xb5   : > { %1720 = vmatprep.subr.bf16.mxu0 %v1719_v30  ;;  %1784 = vmatprep.subr.bf16.mxu1 %v1783_v34  ;;  %v611_v30 = vld [vmem:[%s2455_s29 + $0xbd8] sm:$0xff]  ;;  %v288_v23 = vld [vmem:[%s2455_s29 + $0x1c0] sm:$0xff] }
  0xb6   : > { %v627_v34 = vld [vmem:[%s2455_s29 + $0xc58] sm:$0xff]  ;;  %v1741_v38 = vpack.c.bf16 %v611_v30, %v596_v29  ;;  %v272_v29 = vld [vmem:[%s2455_s29 + $0x140] sm:$0xff]  ;;  %v1887_v30 = vpack.c.bf16 %v288_v23, %v273_v22 }
  0xb7   : > { %v1889_v37 = vpack.c.bf16 %v287_v31, %v272_v29  ;;  %v451_v29 = vld [vmem:[%s2455_s29 + $0x6d8] sm:$0xff]  ;;  %v453_v31 = vld [vmem:[%s2455_s29 + $0x6e8] sm:$0xff] }
  0xb8   : > { %1722 = vmatpush1.bf16.msra.mxu0 %v1721_v40  ;;  %1786 = vmatpush1.bf16.msra.mxu1 %v1785_v41  ;;  %v1743_v40 = vpack.c.bf16 %v642_v35, %v627_v34  ;;  %v626_v41 = vld [vmem:[%s2455_s29 + $0xc50] sm:$0xff]  ;;  %v303_v34 = vld [vmem:[%s2455_s29 + $0x238] sm:$0xff] }
  0xb9   : > { %1724 = vmatprep.subr.bf16.mxu0 %v1723_v42  ;;  %1788 = vmatprep.subr.bf16.mxu1 %v1787_v46  ;;  %v641_v42 = vld [vmem:[%s2455_s29 + $0xcc8] sm:$0xff]  ;;  %v318_v35 = vld [vmem:[%s2455_s29 + $0x2b0] sm:$0xff] }
  0xba   : > { %v657_v46 = vld [vmem:[%s2455_s29 + $0xd48] sm:$0xff]  ;;  %v1745_v50 = vpack.c.bf16 %v641_v42, %v626_v41  ;;  %v302_v41 = vld [vmem:[%s2455_s29 + $0x230] sm:$0xff]  ;;  %v1891_v42 = vpack.c.bf16 %v318_v35, %v303_v34 }
  0xbb   : > { %v1893_v48 = vpack.c.bf16 %v317_v43, %v302_v41  ;;  %v481_v41 = vld [vmem:[%s2455_s29 + $0x7c8] sm:$0xff]  ;;  %v483_v43 = vld [vmem:[%s2455_s29 + $0x7d8] sm:$0xff] }
  0xbc   : > { %1726 = vmatpush1.bf16.msra.mxu0 %v1725_v52  ;;  %1790 = vmatpush1.bf16.msra.mxu1 %v1789_v53  ;;  %v1747_v52 = vpack.c.bf16 %v672_v47, %v657_v46  ;;  %v656_v53 = vld [vmem:[%s2455_s29 + $0xd40] sm:$0xff] }
  0xbd   : > { %1728 = vmatprep.subr.bf16.mxu0 %v1727_v54  ;;  %1792 = vmatprep.subr.bf16.mxu1 %v1791_v58  ;;  %v671_v54 = vld [vmem:[%s2455_s29 + $0xdb8] sm:$0xff]  ;;  %v348_v46 = vld [vmem:[%s2455_s29 + $0x3a0] sm:$0xff] }
  0xbe   : > { %v687_v58 = vld [vmem:[%s2455_s29 + $0xe38] sm:$0xff]  ;;  %v1749_v62 = vpack.c.bf16 %v671_v54, %v656_v53 }
  0xbf   : > { %v347_v54 = vld [vmem:[%s2455_s29 + $0x398] sm:$0xff] }
  0xc0   : > { %1730 = vmatpush1.bf16.msra.mxu0 %v1729_v0  ;;  %1794 = vmatpush1.bf16.msra.mxu1 %v1793_v1  ;;  %v1751_v0 = vpack.c.bf16 %v702_v59, %v687_v58  ;;  %v686_v1 = vld [vmem:[%s2455_s29 + $0xe30] sm:$0xff] }
  0xc1   : > { %1732 = vmatprep.subr.bf16.mxu0 %v1731_v2  ;;  %1796 = vmatprep.subr.bf16.mxu1 %v1795_v6  ;;  %v701_v2 = vld [vmem:[%s2455_s29 + $0xea8] sm:$0xff]  ;;  %v378_v58 = vld [vmem:[%s2455_s29 + $0x490] sm:$0xff] }
  0xc2   : > { %v241_v6 = vld [vmem:[%s2455_s29 + $0x48] sm:$0xff]  ;;  %v1753_v10 = vpack.c.bf16 %v701_v2, %v686_v1  ;;  %v1899_v1 = vpack.c.bf16 %v378_v58, %v363_v57 }
  0xc3   : > { %v377_v2 = vld [vmem:[%s2455_s29 + $0x488] sm:$0xff] }
  0xc4   : > { %1734 = vmatpush1.bf16.msra.mxu0 %v1733_v12  ;;  %1798 = vmatpush1.bf16.msra.mxu1 %v1797_v13  ;;  %v1819_v12 = vpack.c.bf16 %v256_v7, %v241_v6  ;;  %v240_v13 = vld [vmem:[%s2455_s29 + $0x40] sm:$0xff] }
  0xc5   : > { %1736 = vmatprep.subr.bf16.mxu0 %v1735_v14  ;;  %1800 = vmatprep.subr.bf16.mxu1 %v1799_v20  ;;  %v255_v14 = vld [vmem:[%s2455_s29 + $0xb8] sm:$0xff]  ;;  %v408_v6 = vld [vmem:[%s2455_s29 + $0x580] sm:$0xff] }
  0xc6   : > { %v271_v20 = vld [vmem:[%s2455_s29 + $0x138] sm:$0xff]  ;;  %v1821_v24 = vpack.c.bf16 %v255_v14, %v240_v13  ;;  %v1903_v13 = vpack.c.bf16 %v408_v6, %v393_v5 }
  0xc7   : > { %v407_v14 = vld [vmem:[%s2455_s29 + $0x578] sm:$0xff] }
  0xc8   : > { %1738 = vmatpush1.bf16.msra.mxu0 %v1737_v26  ;;  %1802 = vmatpush1.bf16.msra.mxu1 %v1801_v27  ;;  %v1823_v26 = vpack.c.bf16 %v286_v21, %v271_v20  ;;  %v270_v27 = vld [vmem:[%s2455_s29 + $0x130] sm:$0xff] }
  0xc9   : > { %1740 = vmatprep.subr.bf16.mxu0 %v1739_v28  ;;  %1804 = vmatprep.subr.bf16.mxu1 %v1803_v32  ;;  %v285_v28 = vld [vmem:[%s2455_s29 + $0x1a8] sm:$0xff]  ;;  %v438_v20 = vld [vmem:[%s2455_s29 + $0x670] sm:$0xff] }
  0xca   : > { %v301_v32 = vld [vmem:[%s2455_s29 + $0x228] sm:$0xff]  ;;  %v1825_v36 = vpack.c.bf16 %v285_v28, %v270_v27  ;;  %v1907_v27 = vpack.c.bf16 %v438_v20, %v423_v18 }
  0xcb   : > { %v437_v28 = vld [vmem:[%s2455_s29 + $0x668] sm:$0xff] }
  0xcc   : > { %1742 = vmatpush1.bf16.msra.mxu0 %v1741_v38  ;;  %1806 = vmatpush1.bf16.msra.mxu1 %v1805_v39  ;;  %v1827_v38 = vpack.c.bf16 %v316_v33, %v301_v32  ;;  %v300_v39 = vld [vmem:[%s2455_s29 + $0x220] sm:$0xff] }
  0xcd   : > { %1744 = vmatprep.subr.bf16.mxu0 %v1743_v40  ;;  %1808 = vmatprep.subr.bf16.mxu1 %v1807_v44  ;;  %v315_v40 = vld [vmem:[%s2455_s29 + $0x298] sm:$0xff]  ;;  %v468_v32 = vld [vmem:[%s2455_s29 + $0x760] sm:$0xff] }
  0xce   : > { %v331_v44 = vld [vmem:[%s2455_s29 + $0x318] sm:$0xff]  ;;  %v1829_v47 = vpack.c.bf16 %v315_v40, %v300_v39  ;;  %v1911_v39 = vpack.c.bf16 %v468_v32, %v453_v31 }
  0xcf   : > { %v1831_v49 = vpack.c.bf16 %v346_v45, %v331_v44  ;;  %v467_v40 = vld [vmem:[%s2455_s29 + $0x758] sm:$0xff]  ;;  %v498_v44 = vld [vmem:[%s2455_s29 + $0x850] sm:$0xff] }
  0xd0   : > { %1746 = vmatpush1.bf16.msra.mxu0 %v1745_v50  ;;  %1810 = vmatpush1.bf16.msra.mxu1 %v1809_v51  ;;  %v330_v50 = vld [vmem:[%s2455_s29 + $0x310] sm:$0xff]  ;;  %v345_v51 = vld [vmem:[%s2455_s29 + $0x388] sm:$0xff] }
  0xd1   : > { %1748 = vmatprep.subr.bf16.mxu0 %v1747_v52  ;;  %1812 = vmatprep.subr.bf16.mxu1 %v1811_v56  ;;  %v332_v52 = vld [vmem:[%s2455_s29 + $0x320] sm:$0xff]  ;;  %v1833_v59 = vpack.c.bf16 %v345_v51, %v330_v50  ;;  %v1915_v50 = vpack.c.bf16 %v498_v44, %v483_v43  ;;  %v497_v51 = vld [vmem:[%s2455_s29 + $0x848] sm:$0xff] }
  0xd2   : > { %v376_v56 = vld [vmem:[%s2455_s29 + $0x480] sm:$0xff]  ;;  %v1897_v60 = vpack.c.bf16 %v347_v54, %v332_v52  ;;  %v511_v52 = vld [vmem:[%s2455_s29 + $0x8b8] sm:$0xff]  ;;  %v513_v54 = vld [vmem:[%s2455_s29 + $0x8c8] sm:$0xff] }
  0xd3   : > { %v1835_v61 = vpack.c.bf16 %v376_v56, %v361_v55  ;;  %v528_v55 = vld [vmem:[%s2455_s29 + $0x940] sm:$0xff] }
  0xd4   : > { %1750 = vmatpush1.bf16.msra.mxu0 %v1749_v62  ;;  %1814 = vmatpush1.bf16.msra.mxu1 %v1813_v63  ;;  %v360_v62 = vld [vmem:[%s2455_s29 + $0x400] sm:$0xff]  ;;  %v375_v63 = vld [vmem:[%s2455_s29 + $0x478] sm:$0xff] }
  0xd5   : > { %1752 = vmatprep.subr.bf16.mxu0 %v1751_v0  ;;  %1816 = vmatprep.subr.bf16.mxu1 %v1815_v4  ;;  %v362_v0 = vld [vmem:[%s2455_s29 + $0x410] sm:$0xff]  ;;  %v1837_v7 = vpack.c.bf16 %v375_v63, %v360_v62  ;;  %v1919_v62 = vpack.c.bf16 %v528_v55, %v513_v54  ;;  %v527_v63 = vld [vmem:[%s2455_s29 + $0x938] sm:$0xff] }
  0xd6   : > { %v406_v4 = vld [vmem:[%s2455_s29 + $0x570] sm:$0xff]  ;;  %v1901_v8 = vpack.c.bf16 %v377_v2, %v362_v0  ;;  %v541_v0 = vld [vmem:[%s2455_s29 + $0x9a8] sm:$0xff]  ;;  %v543_v2 = vld [vmem:[%s2455_s29 + $0x9b8] sm:$0xff] }
  0xd7   : > { %v1839_v9 = vpack.c.bf16 %v406_v4, %v391_v3  ;;  %v558_v3 = vld [vmem:[%s2455_s29 + $0xa30] sm:$0xff] }
  0xd8   : > { %1754 = vmatpush1.bf16.msra.mxu0 %v1753_v10  ;;  %1818 = vmatpush1.bf16.msra.mxu1 %v1817_v11  ;;  %v390_v10 = vld [vmem:[%s2455_s29 + $0x4f0] sm:$0xff]  ;;  %v405_v11 = vld [vmem:[%s2455_s29 + $0x568] sm:$0xff] }
  0xd9   : > { %1820 = vmatprep.subr.bf16.mxu0 %v1819_v12  ;;  %1884 = vmatprep.subr.bf16.mxu1 %v1883_v17  ;;  %v392_v12 = vld [vmem:[%s2455_s29 + $0x500] sm:$0xff]  ;;  %v1841_v21 = vpack.c.bf16 %v405_v11, %v390_v10  ;;  %v1923_v10 = vpack.c.bf16 %v558_v3, %v543_v2  ;;  %v557_v11 = vld [vmem:[%s2455_s29 + $0xa28] sm:$0xff] }
  0xda   : > { %v436_v17 = vld [vmem:[%s2455_s29 + $0x660] sm:$0xff]  ;;  %v1905_v22 = vpack.c.bf16 %v407_v14, %v392_v12  ;;  %v571_v12 = vld [vmem:[%s2455_s29 + $0xa98] sm:$0xff]  ;;  %v573_v14 = vld [vmem:[%s2455_s29 + $0xaa8] sm:$0xff] }
  0xdb   : > { %930 = vmatmul.mubr.f32.vlgmr.msra.gmra.mrb[2].mxu0 %v2560_v16  ;;  %1001 = vmatmul.mubr.f32.vlgmr.msra.gmra.mrb[2].mxu1 %v2560_v16  ;;  %v333_v16 = vld [vmem:[%s2455_s29 + $0x328] sm:$0xff]  ;;  %v1843_v23 = vpack.c.bf16 %v436_v17, %v421_v15  ;;  %v588_v15 = vld [vmem:[%s2455_s29 + $0xb20] sm:$0xff] }
  0xdc   : > { %1822 = vmatpush1.bf16.msra.mxu0 %v1821_v24  ;;  %1886 = vmatpush1.bf16.msra.mxu1 %v1885_v25  ;;  %v1895_v53 = vpack.c.bf16 %v348_v46, %v333_v16  ;;  %v420_v24 = vld [vmem:[%s2455_s29 + $0x5e0] sm:$0xff]  ;;  %v435_v25 = vld [vmem:[%s2455_s29 + $0x658] sm:$0xff] }
  0xdd   : > { %1824 = vmatprep.subr.bf16.mxu0 %v1823_v26  ;;  %1888 = vmatprep.subr.bf16.mxu1 %v1887_v30  ;;  %v422_v26 = vld [vmem:[%s2455_s29 + $0x5f0] sm:$0xff]  ;;  %v1845_v33 = vpack.c.bf16 %v435_v25, %v420_v24  ;;  %v1927_v24 = vpack.c.bf16 %v588_v15, %v573_v14  ;;  %v587_v25 = vld [vmem:[%s2455_s29 + $0xb18] sm:$0xff] }
  0xde   : > { %1071 = vmatprep.mubr.f32.mxu0 %v2566_v19  ;;  %1142 = vmatprep.mubr.f32.mxu1 %v2566_v19  ;;  %v466_v30 = vld [vmem:[%s2455_s29 + $0x750] sm:$0xff]  ;;  %v1909_v34 = vpack.c.bf16 %v437_v28, %v422_v26  ;;  %v601_v26 = vld [vmem:[%s2455_s29 + $0xb88] sm:$0xff]  ;;  %v603_v28 = vld [vmem:[%s2455_s29 + $0xb98] sm:$0xff] }
  0xdf   : > { %v1847_v35 = vpack.c.bf16 %v466_v30, %v451_v29  ;;  %v618_v29 = vld [vmem:[%s2455_s29 + $0xc10] sm:$0xff] }
  0xe0   : > { %1826 = vmatpush1.bf16.msra.mxu0 %v1825_v36  ;;  %1890 = vmatpush1.bf16.msra.mxu1 %v1889_v37  ;;  %v450_v36 = vld [vmem:[%s2455_s29 + $0x6d0] sm:$0xff]  ;;  %v465_v37 = vld [vmem:[%s2455_s29 + $0x748] sm:$0xff] }
  0xe1   : > { %1828 = vmatprep.subr.bf16.mxu0 %v1827_v38  ;;  %1892 = vmatprep.subr.bf16.mxu1 %v1891_v42  ;;  %v452_v38 = vld [vmem:[%s2455_s29 + $0x6e0] sm:$0xff]  ;;  %v1849_v45 = vpack.c.bf16 %v465_v37, %v450_v36  ;;  %v1931_v36 = vpack.c.bf16 %v618_v29, %v603_v28  ;;  %v617_v37 = vld [vmem:[%s2455_s29 + $0xc08] sm:$0xff]  ;;  %v274_v29 = vld [vmem:[%s2455_s29 + $0x150] sm:$0xff] }
  0xe2   : > { %v496_v42 = vld [vmem:[%s2455_s29 + $0x840] sm:$0xff]  ;;  %v1913_v16 = vpack.c.bf16 %v467_v40, %v452_v38  ;;  %v631_v38 = vld [vmem:[%s2455_s29 + $0xc78] sm:$0xff]  ;;  %v633_v40 = vld [vmem:[%s2455_s29 + $0xc88] sm:$0xff] }
  0xe3   : > { %v1851_v46 = vpack.c.bf16 %v496_v42, %v481_v41  ;;  %v648_v41 = vld [vmem:[%s2455_s29 + $0xd00] sm:$0xff] }
  0xe4   : > { %1830 = vmatpush1.bf16.msra.mxu0 %v1829_v47  ;;  %1894 = vmatpush1.bf16.msra.mxu1 %v1893_v48  ;;  %v480_v47 = vld [vmem:[%s2455_s29 + $0x7c0] sm:$0xff]  ;;  %v495_v48 = vld [vmem:[%s2455_s29 + $0x838] sm:$0xff] }
  0xe5   : > { %1832 = vmatprep.subr.bf16.mxu0 %v1831_v49  ;;  %1896 = vmatprep.subr.bf16.mxu1 %v1895_v53  ;;  %v482_v49 = vld [vmem:[%s2455_s29 + $0x7d0] sm:$0xff]  ;;  %v1853_v56 = vpack.c.bf16 %v495_v48, %v480_v47  ;;  %v1935_v47 = vpack.c.bf16 %v648_v41, %v633_v40  ;;  %v647_v48 = vld [vmem:[%s2455_s29 + $0xcf8] sm:$0xff] }
  0xe6   : > { %v526_v53 = vld [vmem:[%s2455_s29 + $0x930] sm:$0xff]  ;;  %v1917_v57 = vpack.c.bf16 %v497_v51, %v482_v49  ;;  %v661_v49 = vld [vmem:[%s2455_s29 + $0xd68] sm:$0xff]  ;;  %v663_v51 = vld [vmem:[%s2455_s29 + $0xd78] sm:$0xff] }
  0xe7   : > { %v1855_v58 = vpack.c.bf16 %v526_v53, %v511_v52  ;;  %v678_v52 = vld [vmem:[%s2455_s29 + $0xdf0] sm:$0xff] }
  0xe8   : > { %1834 = vmatpush1.bf16.msra.mxu0 %v1833_v59  ;;  %1898 = vmatpush1.bf16.msra.mxu1 %v1897_v60  ;;  %v510_v59 = vld [vmem:[%s2455_s29 + $0x8b0] sm:$0xff]  ;;  %v525_v60 = vld [vmem:[%s2455_s29 + $0x928] sm:$0xff] }
  0xe9   : > { %1836 = vmatprep.subr.bf16.mxu0 %v1835_v61  ;;  %1900 = vmatprep.subr.bf16.mxu1 %v1899_v1  ;;  %v512_v61 = vld [vmem:[%s2455_s29 + $0x8c0] sm:$0xff]  ;;  %v1857_v4 = vpack.c.bf16 %v525_v60, %v510_v59  ;;  %v1939_v59 = vpack.c.bf16 %v678_v52, %v663_v51  ;;  %v677_v60 = vld [vmem:[%s2455_s29 + $0xde8] sm:$0xff] }
  0xea   : > { %v556_v1 = vld [vmem:[%s2455_s29 + $0xa20] sm:$0xff]  ;;  %v1921_v5 = vpack.c.bf16 %v527_v63, %v512_v61  ;;  %v691_v61 = vld [vmem:[%s2455_s29 + $0xe58] sm:$0xff]  ;;  %v693_v63 = vld [vmem:[%s2455_s29 + $0xe68] sm:$0xff] }
  0xeb   : > { %v1859_v6 = vpack.c.bf16 %v556_v1, %v541_v0  ;;  %v708_v0 = vld [vmem:[%s2455_s29 + $0xee0] sm:$0xff] }
  0xec   : > { %1838 = vmatpush1.bf16.msra.mxu0 %v1837_v7  ;;  %1902 = vmatpush1.bf16.msra.mxu1 %v1901_v8  ;;  %v540_v7 = vld [vmem:[%s2455_s29 + $0x9a0] sm:$0xff]  ;;  %v555_v8 = vld [vmem:[%s2455_s29 + $0xa18] sm:$0xff] }
  0xed   : > { %1840 = vmatprep.subr.bf16.mxu0 %v1839_v9  ;;  %1904 = vmatprep.subr.bf16.mxu1 %v1903_v13  ;;  %v542_v9 = vld [vmem:[%s2455_s29 + $0x9b0] sm:$0xff]  ;;  %v1861_v17 = vpack.c.bf16 %v555_v8, %v540_v7  ;;  %v1943_v7 = vpack.c.bf16 %v708_v0, %v693_v63  ;;  %v707_v8 = vld [vmem:[%s2455_s29 + $0xed8] sm:$0xff]  ;;  %v364_v0 = vld [vmem:[%s2455_s29 + $0x420] sm:$0xff] }
  0xee   : > { %v586_v13 = vld [vmem:[%s2455_s29 + $0xb10] sm:$0xff]  ;;  %v1925_v18 = vpack.c.bf16 %v557_v11, %v542_v9  ;;  %v245_v9 = vld [vmem:[%s2455_s29 + $0x68] sm:$0xff] }
  0xef   : > { %v1863_v20 = vpack.c.bf16 %v586_v13, %v571_v12  ;;  %v486_v11 = vld [vmem:[%s2455_s29 + $0x7f0] sm:$0xff]  ;;  %v501_v12 = vld [vmem:[%s2455_s29 + $0x868] sm:$0xff] }
  0xf0   : > { %1842 = vmatpush1.bf16.msra.mxu0 %v1841_v21  ;;  %1906 = vmatpush1.bf16.msra.mxu1 %v1905_v22  ;;  %v570_v21 = vld [vmem:[%s2455_s29 + $0xa90] sm:$0xff]  ;;  %v585_v22 = vld [vmem:[%s2455_s29 + $0xb08] sm:$0xff] }
  0xf1   : > { %1844 = vmatprep.subr.bf16.mxu0 %v1843_v23  ;;  %1908 = vmatprep.subr.bf16.mxu1 %v1907_v27  ;;  %v572_v23 = vld [vmem:[%s2455_s29 + $0xaa0] sm:$0xff]  ;;  %v1865_v30 = vpack.c.bf16 %v585_v22, %v570_v21  ;;  %v290_v21 = vld [vmem:[%s2455_s29 + $0x1d0] sm:$0xff]  ;;  %v2011_v22 = vpack.c.bf16 %v501_v12, %v486_v11 }
  0xf2   : > { %v616_v27 = vld [vmem:[%s2455_s29 + $0xc00] sm:$0xff]  ;;  %v1929_v31 = vpack.c.bf16 %v587_v25, %v572_v23  ;;  %v246_v23 = vld [vmem:[%s2455_s29 + $0x70] sm:$0xff] }
  0xf3   : > { %v1867_v32 = vpack.c.bf16 %v616_v27, %v601_v26  ;;  %v516_v25 = vld [vmem:[%s2455_s29 + $0x8e0] sm:$0xff]  ;;  %v531_v26 = vld [vmem:[%s2455_s29 + $0x958] sm:$0xff]  ;;  %v394_v12 = vld [vmem:[%s2455_s29 + $0x510] sm:$0xff] }
  0xf4   : > { %1846 = vmatpush1.bf16.msra.mxu0 %v1845_v33  ;;  %1910 = vmatpush1.bf16.msra.mxu1 %v1909_v34  ;;  %v600_v33 = vld [vmem:[%s2455_s29 + $0xb80] sm:$0xff]  ;;  %v615_v34 = vld [vmem:[%s2455_s29 + $0xbf8] sm:$0xff] }
  0xf5   : > { %1848 = vmatprep.subr.bf16.mxu0 %v1847_v35  ;;  %1912 = vmatprep.subr.bf16.mxu1 %v1911_v39  ;;  %v602_v35 = vld [vmem:[%s2455_s29 + $0xb90] sm:$0xff]  ;;  %v1869_v42 = vpack.c.bf16 %v615_v34, %v600_v33  ;;  %v320_v33 = vld [vmem:[%s2455_s29 + $0x2c0] sm:$0xff]  ;;  %v2015_v34 = vpack.c.bf16 %v531_v26, %v516_v25 }
  0xf6   : > { %v646_v39 = vld [vmem:[%s2455_s29 + $0xcf0] sm:$0xff]  ;;  %v1933_v43 = vpack.c.bf16 %v617_v37, %v602_v35  ;;  %v276_v35 = vld [vmem:[%s2455_s29 + $0x160] sm:$0xff]  ;;  %v2881_v37 = vld.sshfl [vmem:[%s2447_s27] sm:$0x33 pattern:$0x76325410] }
  0xf7   : > { %v1871_v44 = vpack.c.bf16 %v646_v39, %v631_v38  ;;  %v546_v38 = vld [vmem:[%s2455_s29 + $0x9d0] sm:$0xff]  ;;  %v561_v39 = vld [vmem:[%s2455_s29 + $0xa48] sm:$0xff]  ;;  %v424_v26 = vld [vmem:[%s2455_s29 + $0x600] sm:$0xff] }
  0xf8   : > { %1850 = vmatpush1.bf16.msra.mxu0 %v1849_v45  ;;  %1914 = vmatpush1.bf16.msra.mxu1 %v1913_v16  ;;  %v630_v45 = vld [vmem:[%s2455_s29 + $0xc70] sm:$0xff]  ;;  %v645_v16 = vld [vmem:[%s2455_s29 + $0xce8] sm:$0xff] }
  0xf9   : > { %1852 = vmatprep.subr.bf16.mxu0 %v1851_v46  ;;  %1916 = vmatprep.subr.bf16.mxu1 %v1915_v50  ;;  %v632_v46 = vld [vmem:[%s2455_s29 + $0xc80] sm:$0xff]  ;;  %v1873_v53 = vpack.c.bf16 %v645_v16, %v630_v45  ;;  %v350_v16 = vld [vmem:[%s2455_s29 + $0x3b0] sm:$0xff] }
  0xfa   : > { %v676_v50 = vld [vmem:[%s2455_s29 + $0xde0] sm:$0xff]  ;;  %v1937_v54 = vpack.c.bf16 %v647_v48, %v632_v46  ;;  %v2019_v46 = vpack.c.bf16 %v561_v39, %v546_v38  ;;  %v321_v48 = vld [vmem:[%s2455_s29 + $0x2c8] sm:$0xff]  ;;  %v454_v39 = vld [vmem:[%s2455_s29 + $0x6f0] sm:$0xff] }
  0xfb   : > { %v1875_v55 = vpack.c.bf16 %v676_v50, %v661_v49  ;;  %v576_v49 = vld [vmem:[%s2455_s29 + $0xac0] sm:$0xff]  ;;  %v591_v50 = vld [vmem:[%s2455_s29 + $0xb38] sm:$0xff] }
  0xfc   : > { %1854 = vmatpush1.bf16.msra.mxu0 %v1853_v56  ;;  %1918 = vmatpush1.bf16.msra.mxu1 %v1917_v57  ;;  %v660_v56 = vld [vmem:[%s2455_s29 + $0xd60] sm:$0xff]  ;;  %v675_v57 = vld [vmem:[%s2455_s29 + $0xdd8] sm:$0xff] }
  0xfd   : > { %1856 = vmatprep.subr.bf16.mxu0 %v1855_v58  ;;  %1920 = vmatprep.subr.bf16.mxu1 %v1919_v62  ;;  %v662_v58 = vld [vmem:[%s2455_s29 + $0xd70] sm:$0xff]  ;;  %v1877_v1 = vpack.c.bf16 %v675_v57, %v660_v56  ;;  %v380_v57 = vld [vmem:[%s2455_s29 + $0x4a0] sm:$0xff] }
  0xfe   : > { %v706_v62 = vld [vmem:[%s2455_s29 + $0xed0] sm:$0xff]  ;;  %v1941_v2 = vpack.c.bf16 %v677_v60, %v662_v58  ;;  %v2023_v58 = vpack.c.bf16 %v591_v50, %v576_v49  ;;  %v499_v49 = vld [vmem:[%s2455_s29 + $0x858] sm:$0xff] }
  0xff   : > { %v1879_v3 = vpack.c.bf16 %v706_v62, %v691_v61  ;;  %v606_v60 = vld [vmem:[%s2455_s29 + $0xbb0] sm:$0xff]  ;;  %v621_v61 = vld [vmem:[%s2455_s29 + $0xc28] sm:$0xff] }
 0x100   : > { %1858 = vmatpush1.bf16.msra.mxu0 %v1857_v4  ;;  %1922 = vmatpush1.bf16.msra.mxu1 %v1921_v5  ;;  %v690_v4 = vld [vmem:[%s2455_s29 + $0xe50] sm:$0xff]  ;;  %v705_v5 = vld [vmem:[%s2455_s29 + $0xec8] sm:$0xff] }
 0x101   : > { %1860 = vmatprep.subr.bf16.mxu0 %v1859_v6  ;;  %1924 = vmatprep.subr.bf16.mxu1 %v1923_v10  ;;  %v692_v6 = vld [vmem:[%s2455_s29 + $0xe60] sm:$0xff]  ;;  %v1881_v13 = vpack.c.bf16 %v705_v5, %v690_v4  ;;  %v410_v4 = vld [vmem:[%s2455_s29 + $0x590] sm:$0xff]  ;;  %v2027_v5 = vpack.c.bf16 %v621_v61, %v606_v60  ;;  %v559_v61 = vld [vmem:[%s2455_s29 + $0xa38] sm:$0xff] }
 0x102   : > { %v260_v10 = vld [vmem:[%s2455_s29 + $0xe0] sm:$0xff]  ;;  %v1945_v14 = vpack.c.bf16 %v707_v8, %v692_v6  ;;  %v366_v6 = vld [vmem:[%s2455_s29 + $0x430] sm:$0xff] }
 0x103   : > { %v1947_v15 = vpack.c.bf16 %v260_v10, %v245_v9  ;;  %v636_v8 = vld [vmem:[%s2455_s29 + $0xca0] sm:$0xff]  ;;  %v651_v9 = vld [vmem:[%s2455_s29 + $0xd18] sm:$0xff] }
 0x104   : > { %1862 = vmatpush1.bf16.msra.mxu0 %v1861_v17  ;;  %1926 = vmatpush1.bf16.msra.mxu1 %v1925_v18  ;;  %v244_v17 = vld [vmem:[%s2455_s29 + $0x60] sm:$0xff]  ;;  %v259_v18 = vld [vmem:[%s2455_s29 + $0xd8] sm:$0xff] }
 0x105   : > { %1864 = vmatprep.subr.bf16.mxu0 %v1863_v20  ;;  %1928 = vmatprep.subr.bf16.mxu1 %v1927_v24  ;;  %v275_v20 = vld [vmem:[%s2455_s29 + $0x158] sm:$0xff]  ;;  %v261_v24 = vld [vmem:[%s2455_s29 + $0xe8] sm:$0xff]  ;;  %v1949_v27 = vpack.c.bf16 %v259_v18, %v244_v17  ;;  %v440_v17 = vld [vmem:[%s2455_s29 + $0x680] sm:$0xff]  ;;  %v2031_v18 = vpack.c.bf16 %v651_v9, %v636_v8 }
 0x106   : > { %v1951_v28 = vpack.c.bf16 %v290_v21, %v275_v20  ;;  %v396_v20 = vld [vmem:[%s2455_s29 + $0x520] sm:$0xff]  ;;  %v411_v21 = vld [vmem:[%s2455_s29 + $0x598] sm:$0xff] }
 0x107   : > { %v544_v60 = vld [vmem:[%s2455_s29 + $0x9c0] sm:$0xff]  ;;  %v619_v9 = vld [vmem:[%s2455_s29 + $0xc18] sm:$0xff] }
 0x108   : > { %1866 = vmatpush1.bf16.msra.mxu0 %v1865_v30  ;;  %1930 = vmatpush1.bf16.msra.mxu1 %v1929_v31  ;;  %v289_v30 = vld [vmem:[%s2455_s29 + $0x1c8] sm:$0xff]  ;;  %v604_v8 = vld [vmem:[%s2455_s29 + $0xba0] sm:$0xff] }
 0x109   : > { %1868 = vmatprep.subr.bf16.mxu0 %v1867_v32  ;;  %1932 = vmatprep.subr.bf16.mxu1 %v1931_v36  ;;  %v305_v31 = vld [vmem:[%s2455_s29 + $0x248] sm:$0xff]  ;;  %v2013_v32 = vpack.c.bf16 %v261_v24, %v246_v23  ;;  %v291_v36 = vld [vmem:[%s2455_s29 + $0x1d8] sm:$0xff]  ;;  %v1953_v40 = vpack.c.bf16 %v289_v30, %v274_v29  ;;  %v2033_v29 = vpack.c.bf16 %v411_v21, %v396_v20  ;;  %v470_v30 = vld [vmem:[%s2455_s29 + $0x770] sm:$0xff] }
 0x10a   : > { %v1955_v41 = vpack.c.bf16 %v320_v33, %v305_v31  ;;  %v2017_v45 = vpack.c.bf16 %v291_v36, %v276_v35  ;;  %v681_v23 = vld [vmem:[%s2455_s29 + $0xe08] sm:$0xff]  ;;  %v711_v35 = vld [vmem:[%s2455_s29 + $0xef8] sm:$0xff] }
 0x10b   : > { %v441_v33 = vld [vmem:[%s2455_s29 + $0x688] sm:$0xff] }
 0x10c   : > { %1870 = vmatpush1.bf16.msra.mxu0 %v1869_v42  ;;  %1934 = vmatpush1.bf16.msra.mxu1 %v1933_v43  ;;  %v304_v42 = vld [vmem:[%s2455_s29 + $0x240] sm:$0xff]  ;;  %v319_v43 = vld [vmem:[%s2455_s29 + $0x2b8] sm:$0xff] }
 0x10d   : > { %1872 = vmatprep.subr.bf16.mxu0 %v1871_v44  ;;  %1936 = vmatprep.subr.bf16.mxu1 %v1935_v47  ;;  %v335_v44 = vld [vmem:[%s2455_s29 + $0x338] sm:$0xff]  ;;  %v306_v47 = vld [vmem:[%s2455_s29 + $0x250] sm:$0xff]  ;;  %v1957_v51 = vpack.c.bf16 %v319_v43, %v304_v42  ;;  %v500_v43 = vld [vmem:[%s2455_s29 + $0x860] sm:$0xff] }
 0x10e   : > { %v1959_v52 = vpack.c.bf16 %v350_v16, %v335_v44  ;;  %v2021_v56 = vpack.c.bf16 %v321_v48, %v306_v47  ;;  %v471_v16 = vld [vmem:[%s2455_s29 + $0x778] sm:$0xff]  ;;  %v484_v48 = vld [vmem:[%s2455_s29 + $0x7e0] sm:$0xff] }
 0x110   : > { %1874 = vmatpush1.bf16.msra.mxu0 %v1873_v53  ;;  %1938 = vmatpush1.bf16.msra.mxu1 %v1937_v54  ;;  %v334_v53 = vld [vmem:[%s2455_s29 + $0x330] sm:$0xff]  ;;  %v349_v54 = vld [vmem:[%s2455_s29 + $0x3a8] sm:$0xff] }
 0x111   : > { %1876 = vmatprep.subr.bf16.mxu0 %v1875_v55  ;;  %1940 = vmatprep.subr.bf16.mxu1 %v1939_v59  ;;  %v365_v55 = vld [vmem:[%s2455_s29 + $0x428] sm:$0xff]  ;;  %v336_v59 = vld [vmem:[%s2455_s29 + $0x340] sm:$0xff]  ;;  %v1961_v62 = vpack.c.bf16 %v349_v54, %v334_v53  ;;  %v1981_v53 = vpack.c.bf16 %v499_v49, %v484_v48 }
 0x112   : > { %v1963_v63 = vpack.c.bf16 %v380_v57, %v365_v55  ;;  %v514_v55 = vld [vmem:[%s2455_s29 + $0x8d0] sm:$0xff]  ;;  %v545_v57 = vld [vmem:[%s2455_s29 + $0x9c8] sm:$0xff] }
 0x114   : > { %1878 = vmatpush1.bf16.msra.mxu0 %v1877_v1  ;;  %1942 = vmatpush1.bf16.msra.mxu1 %v1941_v2  ;;  %v379_v1 = vld [vmem:[%s2455_s29 + $0x498] sm:$0xff] }
 0x115   : > { %1880 = vmatprep.subr.bf16.mxu0 %v1879_v3  ;;  %1944 = vmatprep.subr.bf16.mxu1 %v1943_v7  ;;  %v395_v2 = vld [vmem:[%s2455_s29 + $0x518] sm:$0xff]  ;;  %v381_v7 = vld [vmem:[%s2455_s29 + $0x4a8] sm:$0xff]  ;;  %v1965_v10 = vpack.c.bf16 %v379_v1, %v364_v0  ;;  %v1989_v0 = vpack.c.bf16 %v559_v61, %v544_v60 }
 0x116   : > { %v1967_v11 = vpack.c.bf16 %v410_v4, %v395_v2  ;;  %v574_v2 = vld [vmem:[%s2455_s29 + $0xab0] sm:$0xff]  ;;  %v605_v4 = vld [vmem:[%s2455_s29 + $0xba8] sm:$0xff] }
 0x118   : > { %1882 = vmatpush1.bf16.msra.mxu0 %v1881_v13  ;;  %1946 = vmatpush1.bf16.msra.mxu1 %v1945_v14  ;;  %v409_v13 = vld [vmem:[%s2455_s29 + $0x588] sm:$0xff] }
 0x119   : > { %1948 = vmatprep.subr.bf16.mxu0 %v1947_v15  ;;  %2012 = vmatprep.subr.bf16.mxu1 %v2011_v22  ;;  %v425_v14 = vld [vmem:[%s2455_s29 + $0x608] sm:$0xff]  ;;  %v2029_v15 = vpack.c.bf16 %v381_v7, %v366_v6  ;;  %v666_v22 = vld [vmem:[%s2455_s29 + $0xd90] sm:$0xff]  ;;  %v1969_v24 = vpack.c.bf16 %v409_v13, %v394_v12  ;;  %v1997_v12 = vpack.c.bf16 %v619_v9, %v604_v8 }
 0x11a   : > { %v1971_v25 = vpack.c.bf16 %v440_v17, %v425_v14  ;;  %v2035_v31 = vpack.c.bf16 %v681_v23, %v666_v22  ;;  %v634_v14 = vld [vmem:[%s2455_s29 + $0xc90] sm:$0xff]  ;;  %v665_v17 = vld [vmem:[%s2455_s29 + $0xd88] sm:$0xff]  ;;  %v664_v22 = vld [vmem:[%s2455_s29 + $0xd80] sm:$0xff] }
 0x11b   : > { %1072 = vmatmul.mubr.f32.vlgmr.msra.gmra.mrb[4].mxu0 %v2881_v37  ;;  %1143 = vmatmul.mubr.f32.vlgmr.msra.gmra.mrb[4].mxu1 %v2881_v37  ;;  %v679_v23 = vld [vmem:[%s2455_s29 + $0xdf8] sm:$0xff] }
 0x11c   : > { %1950 = vmatpush1.bf16.msra.mxu0 %v1949_v27  ;;  %2014 = vmatpush3.bf16.msra.mxu1 %v2013_v32  ;;  %v439_v27 = vld [vmem:[%s2455_s29 + $0x678] sm:$0xff]  ;;  %v426_v32 = vld [vmem:[%s2455_s29 + $0x610] sm:$0xff] }
 0x11d   : > { %1952 = vmatprep.subr.bf16.mxu0 %v1951_v28  ;;  %2016 = vmatprep.subr.bf16.mxu1 %v2015_v34  ;;  %v455_v28 = vld [vmem:[%s2455_s29 + $0x6f8] sm:$0xff]  ;;  %v696_v34 = vld [vmem:[%s2455_s29 + $0xe80] sm:$0xff]  ;;  %v1973_v36 = vpack.c.bf16 %v439_v27, %v424_v26  ;;  %v2037_v42 = vpack.c.bf16 %v441_v33, %v426_v32  ;;  %v2005_v26 = vpack.c.bf16 %v679_v23, %v664_v22  ;;  %v1310_v33 = vlaneseq }
 0x11e   : > { %1284 = vmatprep.mubr.f32.mxu1 %v2566_v19  ;;  %1213 = vmatprep.mubr.f32.mxu0 %v2566_v19  ;;  %v351_v19 = vld [vmem:[%s2455_s29 + $0x3b8] sm:$0xff]  ;;  %v1975_v38 = vpack.c.bf16 %v470_v30, %v455_v28  ;;  %v2039_v44 = vpack.c.bf16 %v711_v35, %v696_v34  ;;  %v694_v28 = vld [vmem:[%s2455_s29 + $0xe70] sm:$0xff] }
 0x11f   : > { %v2025_v3 = vpack.c.bf16 %v351_v19, %v336_v59  ;;  %v1311_v35 = vshrl.u32 %v1310_v33, 7 }
 0x120   : > { %1954 = vmatpush1.bf16.msra.mxu0 %v1953_v40  ;;  %2018 = vmatpush3.bf16.msra.mxu1 %v2017_v45  ;;  %v469_v40 = vld [vmem:[%s2455_s29 + $0x768] sm:$0xff]  ;;  %v456_v45 = vld [vmem:[%s2455_s29 + $0x700] sm:$0xff] }
 0x121   : > { %1956 = vmatprep.subr.bf16.mxu0 %v1955_v41  ;;  %2020 = vmatprep.subr.bf16.mxu1 %v2019_v46  ;;  %v485_v41 = vld [vmem:[%s2455_s29 + $0x7e8] sm:$0xff]  ;;  %v1977_v46 = vpack.c.bf16 %v469_v40, %v454_v39  ;;  %v2041_v50 = vpack.c.bf16 %v471_v16, %v456_v45 }
 0x122   : > { %v1979_v47 = vpack.c.bf16 %v500_v43, %v485_v41 }
 0x124   : > { %1958 = vmatpush1.bf16.msra.mxu0 %v1957_v51  ;;  %2022 = vmatpush3.bf16.msra.mxu1 %v2021_v56  ;;  %v515_v51 = vld [vmem:[%s2455_s29 + $0x8d8] sm:$0xff]  ;;  %v529_v56 = vld [vmem:[%s2455_s29 + $0x948] sm:$0xff] }
 0x125   : > { %1960 = vmatprep.subr.bf16.mxu0 %v1959_v52  ;;  %2024 = vmatprep.subr.bf16.mxu1 %v2023_v58  ;;  %v530_v52 = vld [vmem:[%s2455_s29 + $0x950] sm:$0xff]  ;;  %v560_v58 = vld [vmem:[%s2455_s29 + $0xa40] sm:$0xff]  ;;  %v1985_v59 = vpack.c.bf16 %v529_v56, %v514_v55 }
 0x126   : > { %v1983_v54 = vpack.c.bf16 %v530_v52, %v515_v51  ;;  %v1987_v19 = vpack.c.bf16 %v560_v58, %v545_v57 }
 0x128   : > { %1962 = vmatpush1.bf16.msra.mxu0 %v1961_v62  ;;  %2026 = vmatpush3.bf16.msra.mxu1 %v2025_v3  ;;  %v575_v62 = vld [vmem:[%s2455_s29 + $0xab8] sm:$0xff]  ;;  %v589_v3 = vld [vmem:[%s2455_s29 + $0xb28] sm:$0xff] }
 0x129   : > { %1964 = vmatprep.subr.bf16.mxu0 %v1963_v63  ;;  %2028 = vmatprep.subr.bf16.mxu1 %v2027_v5  ;;  %v590_v63 = vld [vmem:[%s2455_s29 + $0xb30] sm:$0xff]  ;;  %v620_v5 = vld [vmem:[%s2455_s29 + $0xc20] sm:$0xff]  ;;  %v1993_v6 = vpack.c.bf16 %v589_v3, %v574_v2 }
 0x12a   : > { %v1991_v1 = vpack.c.bf16 %v590_v63, %v575_v62  ;;  %v1995_v7 = vpack.c.bf16 %v620_v5, %v605_v4 }
 0x12c   : > { %1966 = vmatpush1.bf16.msra.mxu0 %v1965_v10  ;;  %2030 = vmatpush3.bf16.msra.mxu1 %v2029_v15  ;;  %v635_v10 = vld [vmem:[%s2455_s29 + $0xc98] sm:$0xff]  ;;  %v649_v15 = vld [vmem:[%s2455_s29 + $0xd08] sm:$0xff] }
 0x12d   : > { %1968 = vmatprep.subr.bf16.mxu0 %v1967_v11  ;;  %2032 = vmatprep.subr.bf16.mxu1 %v2031_v18  ;;  %v650_v11 = vld [vmem:[%s2455_s29 + $0xd10] sm:$0xff]  ;;  %v680_v18 = vld [vmem:[%s2455_s29 + $0xe00] sm:$0xff]  ;;  %v2001_v20 = vpack.c.bf16 %v649_v15, %v634_v14 }
 0x12e   : > { %v1999_v13 = vpack.c.bf16 %v650_v11, %v635_v10  ;;  %v2003_v21 = vpack.c.bf16 %v680_v18, %v665_v17 }
 0x130   : > { %1970 = vmatpush1.bf16.msra.mxu0 %v1969_v24  ;;  %2034 = vmatpush3.bf16.msra.mxu1 %v2033_v29  ;;  %v695_v24 = vld [vmem:[%s2455_s29 + $0xe78] sm:$0xff]  ;;  %v709_v29 = vld [vmem:[%s2455_s29 + $0xee8] sm:$0xff] }
 0x131   : > { %1972 = vmatprep.subr.bf16.mxu0 %v1971_v25  ;;  %2036 = vmatprep.subr.bf16.mxu1 %v2035_v31  ;;  %v710_v25 = vld [vmem:[%s2455_s29 + $0xef0] sm:$0xff]  ;;  %v2009_v30 = vpack.c.bf16 %v709_v29, %v694_v28  ;;  %v2271_v31 = vmov 1983009808  }
 0x132   : > { %v2007_v27 = vpack.c.bf16 %v710_v25, %v695_v24  ;;  %v1308_v32 = vunpack.c.l.s4 %v2271_v31 }
 0x134   : > { %1974 = vmatpush1.bf16.msra.mxu0 %v1973_v36  ;;  %2038 = vmatpush3.bf16.msra.mxu1 %v2037_v42  ;;  %v1309_v34 = vunpack.c.0.s8 %v1308_v32 }
 0x135   : > { %1976 = vmatprep.subr.bf16.mxu0 %v1975_v38  ;;  %2040 = vmatprep.subr.bf16.mxu1 %v2039_v44 }
 0x136   : > { %v1312_v38 = vsub.s32 %v1309_v34, %v1311_v35 }
 0x138   : > { %1978 = vmatpush1.bf16.msra.mxu0 %v1977_v46  ;;  %2042 = vmatpush3.bf16.msra.mxu1 %v2041_v50 }
 0x139   : > { %1980 = vmatprep.subr.bf16.mxu0 %v1979_v47 }
 0x13b   : > { %1285 = vmatmul.mubr.f32.vlgmr.msra.gmra.mrb[6].mxu1 %v2881_v37 }
 0x13c   : > { %1982 = vmatpush1.bf16.msra.mxu0 %v1981_v53 }
 0x13d   : > { %1984 = vmatprep.subr.bf16.mxu0 %v1983_v54 }
 0x140   : > { %1986 = vmatpush1.bf16.msra.mxu0 %v1985_v59 }
 0x141   : > { %1988 = vmatprep.subr.bf16.mxu0 %v1987_v19 }
 0x144   : > { %1990 = vmatpush1.bf16.msra.mxu0 %v1989_v0 }
 0x145   : > { %1992 = vmatprep.subr.bf16.mxu0 %v1991_v1 }
 0x148   : > { %1994 = vmatpush1.bf16.msra.mxu0 %v1993_v6 }
 0x149   : > { %1996 = vmatprep.subr.bf16.mxu0 %v1995_v7 }
 0x14c   : > { %1998 = vmatpush1.bf16.msra.mxu0 %v1997_v12 }
 0x14d   : > { %2000 = vmatprep.subr.bf16.mxu0 %v1999_v13 }
 0x150   : > { %2002 = vmatpush1.bf16.msra.mxu0 %v2001_v20 }
 0x151   : > { %2004 = vmatprep.subr.bf16.mxu0 %v2003_v21 }
 0x154   : > { %2006 = vmatpush1.bf16.msra.mxu0 %v2005_v26 }
 0x155   : > { %2008 = vmatprep.subr.bf16.mxu0 %v2007_v27 }
 0x158   : > { %2010 = vmatpush1.bf16.msra.mxu0 %v2009_v30 }
 0x15b   : > { %1214 = vmatmul.mubr.f32.vlgmr.msra.gmra.mrb[6].mxu0 %v2881_v37 }
 0x16e   : > { %v789_v36 = vpop.f32.mrb[0].mxu0  ;;  %v860_v39 = vpop.f32.mrb[0].mxu1 }
 0x16f   : > { %v791_v40 = vpop.f32.mrb[1].mxu0  ;;  %v862_v42 = vpop.f32.mrb[1].mxu1 }
 0x170   : > { %v1305_v41 = vcombine.low %v789_v36, %v791_v40  ;;  %v1306_v43 = vcombine.low %v860_v39, %v862_v42 }
 0x172   : > { %v1313_v44 = vrot.slane %v1305_v41, %v1312_v38  ;;  %v1320_v45 = vrot.slane %v1306_v43, %v1312_v38 }
 0x174   : > { %v1321_v16 = vcombine.low %v1313_v44, %v1320_v45 }
 0x176   : > { %1376 = vst [vmem:[%s2968_s16] sm:$0xff] %v1321_v16 }
 0x1ae   : > { %v931_v37 = vpop.f32.mrb[2].mxu0  ;;  %v1002_v46 = vpop.f32.mrb[2].mxu1 }
 0x1af   : > { %v933_v47 = vpop.f32.mrb[3].mxu0  ;;  %v1004_v49 = vpop.f32.mrb[3].mxu1 }
 0x1b0   : > { %v1322_v48 = vcombine.low %v931_v37, %v933_v47  ;;  %v1323_v50 = vcombine.low %v1002_v46, %v1004_v49 }
 0x1b2   : > { %v1330_v51 = vrot.slane %v1322_v48, %v1312_v38  ;;  %v1337_v52 = vrot.slane %v1323_v50, %v1312_v38 }
 0x1b4   : > { %v1338_v53 = vcombine.low %v1330_v51, %v1337_v52 }
 0x1b6   : > { %1377 = vst [vmem:[%s2968_s16 + $0x8] sm:$0xff] %v1338_v53 }
 0x1ee   : > { %v1073_v54 = vpop.f32.mrb[4].mxu0  ;;  %v1144_v55 = vpop.f32.mrb[4].mxu1 }
 0x1ef   : > { %v1075_v56 = vpop.f32.mrb[5].mxu0  ;;  %v1146_v58 = vpop.f32.mrb[5].mxu1 }
 0x1f0   : > { %v1339_v57 = vcombine.low %v1073_v54, %v1075_v56  ;;  %v1340_v59 = vcombine.low %v1144_v55, %v1146_v58 }
 0x1f2   : > { %v1347_v19 = vrot.slane %v1339_v57, %v1312_v38  ;;  %v1354_v60 = vrot.slane %v1340_v59, %v1312_v38 }
 0x1f4   : > { %v1355_v61 = vcombine.low %v1347_v19, %v1354_v60 }
 0x1f6   : > { %1378 = vst [vmem:[%s2968_s16 + $0x10] sm:$0xff] %v1355_v61 }
 0x20e   : > { %v1560_v62 = vpop.f32.mrb[6].mxu1 }
 0x20f   : > { %v1561_v63 = vpop.f32.mrb[7].mxu1 }
 0x210   : > { %v1562_v0 = vadd.f32 %v1561_v63, %v1560_v62 }
 0x212   : > { %v1370_v3 = vrot.slane %v1562_v0, %v1312_v38 }
 0x22e   : > { %v1215_v1 = vpop.f32.mrb[6].mxu0 }
 0x22f   : > { %v1217_v2 = vpop.f32.mrb[7].mxu0 }
 0x230   : > { %v1356_v4 = vcombine.low %v1215_v1, %v1217_v2 }
 0x232   : > { %v1363_v5 = vrot.slane %v1356_v4, %v1312_v38 }
 0x234   : > { %v1371_v6 = vcombine.low %v1363_v5, %v1370_v3 }
 0x236   : > { %1379 = vst [vmem:[%s2968_s16 + $0x18] sm:$0x3f] %v1371_v6 }
 0x237   : > { %2192 = shalt.err (!%p2189_p1)
}
 0x238   : > { %s2193_s6 = scalar_lea.hbm %s2978_s7, 480  ;;  %s2197_s27 = scalar_lea.hbm %s3029_s2, 1920 }
 0x239   : > { %p2194_p9 = scmp.ne.s32.totalorder %s2978_s7, %s2193_s6  ;;  %p2198_p5 = scmp.lt.u32.totalorder %s2978_s7, %s3029_s2 }
 0x23a   : > { %p2199_p4 = scmp.lt.u32.totalorder %s2197_s27, %s2193_s6  ;;  %p2201_p13 = scmp.lt.u32.totalorder %s2193_s6, %s2978_s7 }
 0x23b   : > { %p2195_p11 = pnand %p2194_p9, %p3041_p3 }
 0x23c   : > { %p2200_p8 = por %p2199_p4, %p2198_p5 }
 0x23d   : > { %p2196_p2 = pneg %p2195_p11 }
 0x23e   : > { %p2202_p6 = por %p2201_p13, %p2200_p8 }
 0x240   : > { %p2203_p12 = pnand %p2202_p6, %p2196_p2 }
 0x242   : > { %2206 = shalt.err (!%p2203_p12)
}
 0x243   : > { %2052 = dma.vmem_to_hbm [thread:$0]  (%p3041_p3), %s2980_s30, 480, %s2978_s7, %s1381_s8  }
 0x244 PF: > { %p2066_p7 = scmp.ge.s32.totalorder %s2265_s14, 2  ;;  %s1411_s29 = sand.u32 1, %s2245_s9  }
 0x245   : > { %p3042_p10 = scmp.ne.s32.totalorder %s3035_s24, 0  ;;  %s1412_s21 = scalar_lea.sflag [#allocation4], %s1411_s29 }
 0x247   : > { %p2062_p0 = pnand %p2066_p7, %p3042_p10 }
 0x249   : > { %2240 = dma.done.wait (!%p2062_p0), %s1412_s21, 480  }
 0x24a   : > { %2242 = vsyncadd (!%p2062_p0), %s1412_s21, 4294966816  ;;  %s21_s14 = sadd.s32 1, %s2265_s14   ;;  %s3043_s9 = smov %s2249_s10 }
 0x24b   : > { %p18_p1 = scmp.ge.s32.totalorder %s21_s14, 6   ;;  %s3044_s10 = smov %s2253_s11 }
 0x24c   : > { %s3045_s11 = smov %s2344_s23  ;;  %s3046_s12 = smov %s2261_s13 }
 0x24d   : > { %s3047_s13 = smov %s3049_s17  ;;  %20 = sbr.rel (!%p18_p1) target bundleno = 8 (0x8), region = 86 }
 0x254   :  { %1417 = vsyncpa [#allocation3], 1 }
 0x255   :  { %1419 = vsyncpa [#allocation3 + $0x1], 1 }
 0x256   :  { %1420 = vsyncpa [#allocation6], 1 }
 0x257   :  { %1422 = vsyncpa [#allocation6 + $0x1], 1 }
 0x258   :  { %1423 = vsyncpa [#allocation4], 1 }
 0x259   :  { %1425 = vsyncpa [#allocation4 + $0x1], 1 }

</bundles_post_ra>
